<compile_context>
chip_gen: v6e
topology: v6e:2x2x1
jax: 0.10.0
libtpu: 0.0.40
codegen_flags: <defaults>
</compile_context>

<pallas_src>
import math

import jax
import jax.numpy as jnp
from jax import lax
from jax.experimental import pallas as pl
from jax.experimental.pallas import tpu as pltpu

# Hyper-parameters consistent with the module's constructor.
N_LAYERS = 2
HIDDEN = 32
N_HEADS = 4
D_K = HIDDEN // N_HEADS
FF = 64
BATCH = 2
SEQ = 8
LN_EPS = 1e-6

N_TOK = BATCH * SEQ          # flattened token count (batch folded into rows)
LANES = 128                  # lane width of the packed parameter slab

# Row offsets inside the packed (SLAB_ROWS, 128) parameter slab.
R_WQKV = 0                   # (HIDDEN, 3*HIDDEN)   fused [q|k|v] weights, q pre-scaled
R_WO = R_WQKV + HIDDEN       # (HIDDEN, HIDDEN)     attention output projection
R_WP = R_WO + HIDDEN         # (HIDDEN, HIDDEN)     self.projection
R_W1 = R_WP + HIDDEN         # (HIDDEN, FF)         feed_forward first linear
R_W2 = R_W1 + HIDDEN         # (FF, HIDDEN)         feed_forward second linear
R_VEC = R_W2 + FF            # 9 rows of biases / LayerNorm params
SLAB_ROWS = ((R_VEC + 9 + 7) // 8) * 8   # pad row count to a multiple of 8 (= 208)


def _gelu(x):
    # BERT-pytorch GELU (tanh approximation).
    return 0.5 * x * (1.0 + jnp.tanh(math.sqrt(2.0 / math.pi) * (x + 0.044715 * x ** 3)))


# -----------------------------------------------------------------------------
# Pallas kernel: the entire forward pass in one invocation (no grid).
# -----------------------------------------------------------------------------
def transformer_kernel(x_ref, madd_ref, w_ref, o_ref):
    H, DK, NH, NT = HIDDEN, D_K, N_HEADS, N_TOK

    # ---- loop-invariant parameters: sliced from the single VMEM slab, loaded once ----
    wqkv = w_ref[R_WQKV:R_WQKV + H, 0:3 * H]     # (H, 3H); q columns pre-scaled by 1/sqrt(DK)
    wo = w_ref[R_WO:R_WO + H, 0:H]               # (H, H)
    wp = w_ref[R_WP:R_WP + H, 0:H]               # (H, H)
    w1 = w_ref[R_W1:R_W1 + H, 0:FF]              # (H, FF)
    w2 = w_ref[R_W2:R_W2 + FF, 0:H]              # (FF, H)
    bqkv = w_ref[R_VEC + 0:R_VEC + 1, 0:3 * H]   # (1, 3H)
    bo = w_ref[R_VEC + 1:R_VEC + 2, 0:H]
    bp = w_ref[R_VEC + 2:R_VEC + 3, 0:H]
    b1 = w_ref[R_VEC + 3:R_VEC + 4, 0:FF]
    b2 = w_ref[R_VEC + 4:R_VEC + 5, 0:H]
    ln1a = w_ref[R_VEC + 5:R_VEC + 6, 0:H]
    ln1b = w_ref[R_VEC + 6:R_VEC + 7, 0:H]
    ln2a = w_ref[R_VEC + 7:R_VEC + 8, 0:H]
    ln2b = w_ref[R_VEC + 8:R_VEC + 9, 0:H]

    # Additive mask (0 / -1e9), block-diagonal over batches: computed ONCE in the wrapper.
    madd = madd_ref[...]                          # (NT, NT)

    def layer_norm(t, a, b):
        # a * (t - mean) / (std + eps) + b with unbiased std (torch.Tensor.std default).
        # Exact f32 division here (approx reciprocal caused the previous accuracy failure).
        mean = jnp.mean(t, axis=-1, keepdims=True)
        var = jnp.sum((t - mean) ** 2, axis=-1, keepdims=True) * (1.0 / (H - 1))
        return a * (t - mean) / (jnp.sqrt(var) + LN_EPS) + b

    x0 = x_ref[...].astype(jnp.float32)           # (NT, H)

    def layer(_, x2):
        # ---- multi-head self-attention (q = k = v = x) ----
        # One fused QKV matmul across all heads: (NT, H) @ (H, 3H).
        qkv = jnp.dot(x2, wqkv, preferred_element_type=jnp.float32) + bqkv   # (NT, 3H)

        heads_out = None
        for h in range(NH):                        # trace-time unrolled; NH = 4
            q = qkv[:, h * DK:(h + 1) * DK]                   # (NT, DK) — scale folded in
            k = qkv[:, H + h * DK:H + (h + 1) * DK]
            v = qkv[:, 2 * H + h * DK:2 * H + (h + 1) * DK]

            s = jnp.einsum('qd,kd->qk', q, k,
                           preferred_element_type=jnp.float32) + madd        # (NT, NT)
            # Fully-masked rows (exp of all -1e9) would give uniform attention, matching the
            # PyTorch -1e9 masked_fill behaviour; keep the max-subtraction for stability.
            s = s - jnp.max(s, axis=-1, keepdims=True)
            p = jnp.exp(s)
            p = p / jnp.sum(p, axis=-1, keepdims=True)

            ctx = jnp.dot(p, v, preferred_element_type=jnp.float32)          # (NT, DK)
            part = jnp.dot(ctx, wo[h * DK:(h + 1) * DK, :],
                           preferred_element_type=jnp.float32)               # (NT, H)
            heads_out = part if heads_out is None else heads_out + part
        attn = heads_out + bo                                                 # (NT, H)

        # ---- x = LayerNorm(x + projection(x)) ----
        proj = jnp.dot(attn, wp, preferred_element_type=jnp.float32) + bp
        y1 = layer_norm(attn + proj, ln1a, ln1b)

        # ---- x = LayerNorm(x + FeedForward(x)) ----
        hmid = _gelu(jnp.dot(y1, w1, preferred_element_type=jnp.float32) + b1)
        ffn = jnp.dot(hmid, w2, preferred_element_type=jnp.float32) + b2
        return layer_norm(y1 + ffn, ln2a, ln2b)

    # ALBERT weight sharing: apply the same layer N_LAYERS times, fully in-VMEM.
    y = lax.fori_loop(0, N_LAYERS, layer, x0, unroll=True)
    o_ref[...] = y.astype(o_ref.dtype)


# -----------------------------------------------------------------------------
# One-time packing (hoisted out of the per-call jit).
# -----------------------------------------------------------------------------
def pack_params(params):
    """Pack all 18 parameters into a single lane-dense (SLAB_ROWS, 128) f32 slab."""
    (wq, bq, wk, bk, wv, bv, wo, bo, wp, bp, w1, b1, w2, b2,
     ln1a, ln1b, ln2a, ln2b) = params
    scale = 1.0 / math.sqrt(D_K)

    # Fused [q|k|v] weights/biases; fold 1/sqrt(d_k) into the q part (zero in-kernel cost).
    wqkv = jnp.concatenate([wq * scale, wk, wv], axis=1)          # (H, 3H)
    bqkv = jnp.concatenate([bq * scale, bk, bv], axis=1)          # (1, 3H)

    def padw(m):
        return jnp.pad(m, ((0, 0), (0, LANES - m.shape[1])))

    slab = jnp.concatenate(
        [padw(wqkv), padw(wo), padw(wp), padw(w1), padw(w2),
         padw(bqkv), padw(bo), padw(bp), padw(b1), padw(b2),
         padw(ln1a), padw(ln1b), padw(ln2a), padw(ln2b)], axis=0)  # (201, 128)
    slab = jnp.pad(slab, ((0, SLAB_ROWS - slab.shape[0]), (0, 0)))  # (208, 128)
    return slab


def build_additive_mask(mask):
    """(B,S,S) 0/1 mask -> (B*S, B*S) additive mask: -1e9 for masked or cross-batch pairs."""
    padd = jnp.where(mask == 0, jnp.float32(-1e9), jnp.float32(0.0))     # (B, S, S)
    eye = jnp.eye(BATCH, dtype=jnp.float32)[:, None, :, None]            # (B, 1, B, 1)
    madd4 = eye * padd[:, :, None, :] + (1.0 - eye) * jnp.float32(-1e9)  # (B, S, B, S)
    return madd4.reshape(N_TOK, N_TOK)


# -----------------------------------------------------------------------------
# Jitted forward: one pallas_call, 3 input DMAs (x, mask, weight slab), 1 output.
# -----------------------------------------------------------------------------
@jax.jit
def transformer_forward(x, madd, wslab):
    x2d = x.reshape(N_TOK, HIDDEN)
    vmem = pl.BlockSpec(memory_space=pltpu.MemorySpace.VMEM)
    y = pl.pallas_call(
        transformer_kernel,
        out_shape=jax.ShapeDtypeStruct((N_TOK, HIDDEN), jnp.float32),
        in_specs=[vmem, vmem, vmem],
        out_specs=vmem,
    )(x2d, madd, wslab)
    return y.reshape(BATCH, SEQ, HIDDEN)


# ---------------- pure-JAX reference (for correctness check) ----------------
def _layer_norm_ref(x, a, b):
    mean = jnp.mean(x, axis=-1, keepdims=True)
    var = jnp.sum((x - mean) ** 2, axis=-1, keepdims=True) / (x.shape[-1] - 1)
    return a * (x - mean) / (jnp.sqrt(var) + LN_EPS) + b


def ref_forward(x, mask, params, n_layers):
    (wq, bq, wk, bk, wv, bv, wo, bo, wp, bp, w1, b1, w2, b2,
     ln1a, ln1b, ln2a, ln2b) = params
    B, S, H = x.shape

    def heads(t):
        return t.reshape(B, S, N_HEADS, D_K).transpose(0, 2, 1, 3)

    for _ in range(n_layers):
        q, k, v = x @ wq + bq, x @ wk + bk, x @ wv + bv
        qh, kh, vh = heads(q), heads(k), heads(v)
        s = jnp.einsum("bhqd,bhkd->bhqk", qh, kh) / math.sqrt(D_K)
        s = jnp.where(mask[:, None, :, :] == 0, -1e9, s)
        p = jax.nn.softmax(s, axis=-1)
        ctx = jnp.einsum("bhqk,bhkd->bhqd", p, vh).transpose(0, 2, 1, 3).reshape(B, S, H)
        attn = ctx @ wo + bo
        y1 = _layer_norm_ref(attn + (attn @ wp + bp), ln1a, ln1b)
        ffn = _gelu(y1 @ w1 + b1) @ w2 + b2
        x = _layer_norm_ref(y1 + ffn, ln2a, ln2b)
    return x


def init_params(key):
    ks = jax.random.split(key, 14)
    w = lambda k, shp: 0.05 * jax.random.normal(k, shp, jnp.float32)
    wq, bq = w(ks[0], (HIDDEN, HIDDEN)), w(ks[1], (1, HIDDEN))
    wk, bk = w(ks[2], (HIDDEN, HIDDEN)), w(ks[3], (1, HIDDEN))
    wv, bv = w(ks[4], (HIDDEN, HIDDEN)), w(ks[5], (1, HIDDEN))
    wo, bo = w(ks[6], (HIDDEN, HIDDEN)), w(ks[7], (1, HIDDEN))
    wp, bp = w(ks[8], (HIDDEN, HIDDEN)), w(ks[9], (1, HIDDEN))
    w1, b1 = w(ks[10], (HIDDEN, FF)), w(ks[11], (1, FF))
    w2, b2 = w(ks[12], (FF, HIDDEN)), w(ks[13], (1, HIDDEN))
    ln1a, ln1b = jnp.ones((1, HIDDEN), jnp.float32), jnp.zeros((1, HIDDEN), jnp.float32)
    ln2a, ln2b = jnp.ones((1, HIDDEN), jnp.float32), jnp.zeros((1, HIDDEN), jnp.float32)
    return (wq, bq, wk, bk, wv, bv, wo, bo, wp, bp, w1, b1, w2, b2,
            ln1a, ln1b, ln2a, ln2b)


if __name__ == "__main__":
    key = jax.random.PRNGKey(0)
    kp, kx = jax.random.split(key)
    params = init_params(kp)

    x = jax.random.normal(kx, (BATCH, SEQ, HIDDEN), jnp.float32)
    # Padding mask: batch 0 fully valid, batch 1 has last 2 positions padded.
    lengths = jnp.array([SEQ, SEQ - 2])
    valid = (jnp.arange(SEQ)[None, :] < lengths[:, None]).astype(jnp.float32)   # (B, S)
    mask = jnp.broadcast_to(valid[:, None, :], (BATCH, SEQ, SEQ))               # (B, S, S)

    # One-time packing, outside the jitted per-call path.
    wslab = jax.block_until_ready(pack_params(params))                          # (208, 128)
    madd = jax.block_until_ready(build_additive_mask(mask))                     # (16, 16)

    out = transformer_forward(x, madd, wslab)
    out = jax.block_until_ready(out)

    ref = ref_forward(x, mask, params, N_LAYERS)
    assert out.shape == (BATCH, SEQ, HIDDEN)
    err = float(jnp.max(jnp.abs(out - ref)))
    # Exact f32 math everywhere now; only matmul-grouping / scale-folding rounding remains.
    assert jnp.allclose(out, ref, atol=1e-3, rtol=1e-3), err
    print("KERNEL_OK")
</pallas_src>

<mosaic_0001>
module attributes {stable_mosaic.version = 11 : i64} {
  func.func @transformer_kernel(%arg0: memref<16x32xf32, #tpu.memory_space<vmem>>, %arg1: memref<16x16xf32, #tpu.memory_space<vmem>>, %arg2: memref<208x128xf32, #tpu.memory_space<vmem>>, %arg3: memref<16x32xf32, #tpu.memory_space<vmem>>) attributes {dimension_semantics = [], scalar_prefetch = 0 : i64, scratch_operands = 0 : i64, tpu.core_type = #tpu.core_type<tc>} {
    %c0 = arith.constant 0 : index
    %c0_0 = arith.constant 0 : index
    %0 = vector.load %arg2[%c0, %c0_0] : memref<208x128xf32, #tpu.memory_space<vmem>>, vector<32x96xf32>
    %c32 = arith.constant 32 : index
    %c0_1 = arith.constant 0 : index
    %1 = vector.load %arg2[%c32, %c0_1] : memref<208x128xf32, #tpu.memory_space<vmem>>, vector<32x32xf32>
    %c64 = arith.constant 64 : index
    %c0_2 = arith.constant 0 : index
    %2 = vector.load %arg2[%c64, %c0_2] : memref<208x128xf32, #tpu.memory_space<vmem>>, vector<32x32xf32>
    %c96 = arith.constant 96 : index
    %c0_3 = arith.constant 0 : index
    %3 = vector.load %arg2[%c96, %c0_3] : memref<208x128xf32, #tpu.memory_space<vmem>>, vector<32x64xf32>
    %c128 = arith.constant 128 : index
    %c0_4 = arith.constant 0 : index
    %4 = vector.load %arg2[%c128, %c0_4] : memref<208x128xf32, #tpu.memory_space<vmem>>, vector<64x32xf32>
    %c192 = arith.constant 192 : index
    %c0_5 = arith.constant 0 : index
    %5 = vector.load %arg2[%c192, %c0_5] : memref<208x128xf32, #tpu.memory_space<vmem>>, vector<1x96xf32>
    %c193 = arith.constant 193 : index
    %c0_6 = arith.constant 0 : index
    %6 = vector.load %arg2[%c193, %c0_6] : memref<208x128xf32, #tpu.memory_space<vmem>>, vector<1x32xf32>
    %c194 = arith.constant 194 : index
    %c0_7 = arith.constant 0 : index
    %7 = vector.load %arg2[%c194, %c0_7] : memref<208x128xf32, #tpu.memory_space<vmem>>, vector<1x32xf32>
    %c195 = arith.constant 195 : index
    %c0_8 = arith.constant 0 : index
    %8 = vector.load %arg2[%c195, %c0_8] : memref<208x128xf32, #tpu.memory_space<vmem>>, vector<1x64xf32>
    %c196 = arith.constant 196 : index
    %c0_9 = arith.constant 0 : index
    %9 = vector.load %arg2[%c196, %c0_9] : memref<208x128xf32, #tpu.memory_space<vmem>>, vector<1x32xf32>
    %c197 = arith.constant 197 : index
    %c0_10 = arith.constant 0 : index
    %10 = vector.load %arg2[%c197, %c0_10] : memref<208x128xf32, #tpu.memory_space<vmem>>, vector<1x32xf32>
    %c198 = arith.constant 198 : index
    %c0_11 = arith.constant 0 : index
    %11 = vector.load %arg2[%c198, %c0_11] : memref<208x128xf32, #tpu.memory_space<vmem>>, vector<1x32xf32>
    %c199 = arith.constant 199 : index
    %c0_12 = arith.constant 0 : index
    %12 = vector.load %arg2[%c199, %c0_12] : memref<208x128xf32, #tpu.memory_space<vmem>>, vector<1x32xf32>
    %c200 = arith.constant 200 : index
    %c0_13 = arith.constant 0 : index
    %13 = vector.load %arg2[%c200, %c0_13] : memref<208x128xf32, #tpu.memory_space<vmem>>, vector<1x32xf32>
    %c0_14 = arith.constant 0 : index
    %c0_15 = arith.constant 0 : index
    %14 = vector.load %arg1[%c0_14, %c0_15] : memref<16x16xf32, #tpu.memory_space<vmem>>, vector<16x16xf32>
    %c0_16 = arith.constant 0 : index
    %c0_17 = arith.constant 0 : index
    %15 = vector.load %arg0[%c0_16, %c0_17] : memref<16x32xf32, #tpu.memory_space<vmem>>, vector<16x32xf32>
    %c0_i32 = arith.constant 0 : i32
    %cst = arith.constant dense<0.000000e+00> : vector<16x96xf32>
    %16 = tpu.matmul %15, %0, %cst {dimension_numbers = #tpu.dot_dimension_numbers<[1], [0], [0], [1], [0, 0, 1, 1], [], []>} : vector<16x32xf32>, vector<32x96xf32>, vector<16x96xf32> -> vector<16x96xf32>
    %17 = vector.broadcast %5 : vector<1x96xf32> to vector<16x96xf32>
    %18 = arith.addf %16, %17 : vector<16x96xf32>
    %19 = vector.extract_strided_slice %18 {offsets = [0, 0], sizes = [16, 8], strides = [1, 1]} : vector<16x96xf32> to vector<16x8xf32>
    %20 = vector.extract_strided_slice %18 {offsets = [0, 32], sizes = [16, 8], strides = [1, 1]} : vector<16x96xf32> to vector<16x8xf32>
    %21 = vector.extract_strided_slice %18 {offsets = [0, 64], sizes = [16, 8], strides = [1, 1]} : vector<16x96xf32> to vector<16x8xf32>
    "tpu.trace_start"() <{level = 10 : i32, message = "qd,kd->qk"}> : () -> ()
    %cst_18 = arith.constant dense<0.000000e+00> : vector<16x16xf32>
    %22 = tpu.matmul %19, %20, %cst_18 {dimension_numbers = #tpu.dot_dimension_numbers<[1], [1], [0], [0], [0, 0, 1, 0], [], []>} : vector<16x8xf32>, vector<16x8xf32>, vector<16x16xf32> -> vector<16x16xf32>
    "tpu.trace_stop"() : () -> ()
    %23 = arith.addf %22, %14 : vector<16x16xf32>
    %cst_19 = arith.constant dense<0xFF800000> : vector<16xf32>
    %24 = vector.multi_reduction <maximumf>, %23, %cst_19 [1] : vector<16x16xf32> to vector<16xf32>
    %25 = vector.shape_cast %24 : vector<16xf32> to vector<16x1xf32>
    %26 = vector.broadcast %25 : vector<16x1xf32> to vector<16x16xf32>
    %27 = arith.subf %23, %26 : vector<16x16xf32>
    %28 = math.exp %27 : vector<16x16xf32>
    %cst_20 = arith.constant dense<0.000000e+00> : vector<16xf32>
    %29 = vector.multi_reduction <add>, %28, %cst_20 [1] : vector<16x16xf32> to vector<16xf32>
    %30 = vector.shape_cast %29 : vector<16xf32> to vector<16x1xf32>
    %31 = vector.broadcast %30 : vector<16x1xf32> to vector<16x16xf32>
    %32 = arith.divf %28, %31 : vector<16x16xf32>
    %cst_21 = arith.constant dense<0.000000e+00> : vector<16x8xf32>
    %33 = tpu.matmul %32, %21, %cst_21 {dimension_numbers = #tpu.dot_dimension_numbers<[1], [0], [0], [1], [0, 0, 1, 1], [], []>} : vector<16x16xf32>, vector<16x8xf32>, vector<16x8xf32> -> vector<16x8xf32>
    %34 = vector.extract_strided_slice %1 {offsets = [0, 0], sizes = [8, 32], strides = [1, 1]} : vector<32x32xf32> to vector<8x32xf32>
    %cst_22 = arith.constant dense<0.000000e+00> : vector<16x32xf32>
    %35 = tpu.matmul %33, %34, %cst_22 {dimension_numbers = #tpu.dot_dimension_numbers<[1], [0], [0], [1], [0, 0, 1, 1], [], []>} : vector<16x8xf32>, vector<8x32xf32>, vector<16x32xf32> -> vector<16x32xf32>
    %36 = vector.extract_strided_slice %18 {offsets = [0, 8], sizes = [16, 8], strides = [1, 1]} : vector<16x96xf32> to vector<16x8xf32>
    %37 = vector.extract_strided_slice %18 {offsets = [0, 40], sizes = [16, 8], strides = [1, 1]} : vector<16x96xf32> to vector<16x8xf32>
    %38 = vector.extract_strided_slice %18 {offsets = [0, 72], sizes = [16, 8], strides = [1, 1]} : vector<16x96xf32> to vector<16x8xf32>
    "tpu.trace_start"() <{level = 10 : i32, message = "qd,kd->qk"}> : () -> ()
    %cst_23 = arith.constant dense<0.000000e+00> : vector<16x16xf32>
    %39 = tpu.matmul %36, %37, %cst_23 {dimension_numbers = #tpu.dot_dimension_numbers<[1], [1], [0], [0], [0, 0, 1, 0], [], []>} : vector<16x8xf32>, vector<16x8xf32>, vector<16x16xf32> -> vector<16x16xf32>
    "tpu.trace_stop"() : () -> ()
    %40 = arith.addf %39, %14 : vector<16x16xf32>
    %cst_24 = arith.constant dense<0xFF800000> : vector<16xf32>
    %41 = vector.multi_reduction <maximumf>, %40, %cst_24 [1] : vector<16x16xf32> to vector<16xf32>
    %42 = vector.shape_cast %41 : vector<16xf32> to vector<16x1xf32>
    %43 = vector.broadcast %42 : vector<16x1xf32> to vector<16x16xf32>
    %44 = arith.subf %40, %43 : vector<16x16xf32>
    %45 = math.exp %44 : vector<16x16xf32>
    %cst_25 = arith.constant dense<0.000000e+00> : vector<16xf32>
    %46 = vector.multi_reduction <add>, %45, %cst_25 [1] : vector<16x16xf32> to vector<16xf32>
    %47 = vector.shape_cast %46 : vector<16xf32> to vector<16x1xf32>
    %48 = vector.broadcast %47 : vector<16x1xf32> to vector<16x16xf32>
    %49 = arith.divf %45, %48 : vector<16x16xf32>
    %cst_26 = arith.constant dense<0.000000e+00> : vector<16x8xf32>
    %50 = tpu.matmul %49, %38, %cst_26 {dimension_numbers = #tpu.dot_dimension_numbers<[1], [0], [0], [1], [0, 0, 1, 1], [], []>} : vector<16x16xf32>, vector<16x8xf32>, vector<16x8xf32> -> vector<16x8xf32>
    %51 = vector.extract_strided_slice %1 {offsets = [8, 0], sizes = [8, 32], strides = [1, 1]} : vector<32x32xf32> to vector<8x32xf32>
    %cst_27 = arith.constant dense<0.000000e+00> : vector<16x32xf32>
    %52 = tpu.matmul %50, %51, %cst_27 {dimension_numbers = #tpu.dot_dimension_numbers<[1], [0], [0], [1], [0, 0, 1, 1], [], []>} : vector<16x8xf32>, vector<8x32xf32>, vector<16x32xf32> -> vector<16x32xf32>
    %53 = arith.addf %35, %52 : vector<16x32xf32>
    %54 = vector.extract_strided_slice %18 {offsets = [0, 16], sizes = [16, 8], strides = [1, 1]} : vector<16x96xf32> to vector<16x8xf32>
    %55 = vector.extract_strided_slice %18 {offsets = [0, 48], sizes = [16, 8], strides = [1, 1]} : vector<16x96xf32> to vector<16x8xf32>
    %56 = vector.extract_strided_slice %18 {offsets = [0, 80], sizes = [16, 8], strides = [1, 1]} : vector<16x96xf32> to vector<16x8xf32>
    "tpu.trace_start"() <{level = 10 : i32, message = "qd,kd->qk"}> : () -> ()
    %cst_28 = arith.constant dense<0.000000e+00> : vector<16x16xf32>
    %57 = tpu.matmul %54, %55, %cst_28 {dimension_numbers = #tpu.dot_dimension_numbers<[1], [1], [0], [0], [0, 0, 1, 0], [], []>} : vector<16x8xf32>, vector<16x8xf32>, vector<16x16xf32> -> vector<16x16xf32>
    "tpu.trace_stop"() : () -> ()
    %58 = arith.addf %57, %14 : vector<16x16xf32>
    %cst_29 = arith.constant dense<0xFF800000> : vector<16xf32>
    %59 = vector.multi_reduction <maximumf>, %58, %cst_29 [1] : vector<16x16xf32> to vector<16xf32>
    %60 = vector.shape_cast %59 : vector<16xf32> to vector<16x1xf32>
    %61 = vector.broadcast %60 : vector<16x1xf32> to vector<16x16xf32>
    %62 = arith.subf %58, %61 : vector<16x16xf32>
    %63 = math.exp %62 : vector<16x16xf32>
    %cst_30 = arith.constant dense<0.000000e+00> : vector<16xf32>
    %64 = vector.multi_reduction <add>, %63, %cst_30 [1] : vector<16x16xf32> to vector<16xf32>
    %65 = vector.shape_cast %64 : vector<16xf32> to vector<16x1xf32>
    %66 = vector.broadcast %65 : vector<16x1xf32> to vector<16x16xf32>
    %67 = arith.divf %63, %66 : vector<16x16xf32>
    %cst_31 = arith.constant dense<0.000000e+00> : vector<16x8xf32>
    %68 = tpu.matmul %67, %56, %cst_31 {dimension_numbers = #tpu.dot_dimension_numbers<[1], [0], [0], [1], [0, 0, 1, 1], [], []>} : vector<16x16xf32>, vector<16x8xf32>, vector<16x8xf32> -> vector<16x8xf32>
    %69 = vector.extract_strided_slice %1 {offsets = [16, 0], sizes = [8, 32], strides = [1, 1]} : vector<32x32xf32> to vector<8x32xf32>
    %cst_32 = arith.constant dense<0.000000e+00> : vector<16x32xf32>
    %70 = tpu.matmul %68, %69, %cst_32 {dimension_numbers = #tpu.dot_dimension_numbers<[1], [0], [0], [1], [0, 0, 1, 1], [], []>} : vector<16x8xf32>, vector<8x32xf32>, vector<16x32xf32> -> vector<16x32xf32>
    %71 = arith.addf %53, %70 : vector<16x32xf32>
    %72 = vector.extract_strided_slice %18 {offsets = [0, 24], sizes = [16, 8], strides = [1, 1]} : vector<16x96xf32> to vector<16x8xf32>
    %73 = vector.extract_strided_slice %18 {offsets = [0, 56], sizes = [16, 8], strides = [1, 1]} : vector<16x96xf32> to vector<16x8xf32>
    %74 = vector.extract_strided_slice %18 {offsets = [0, 88], sizes = [16, 8], strides = [1, 1]} : vector<16x96xf32> to vector<16x8xf32>
    "tpu.trace_start"() <{level = 10 : i32, message = "qd,kd->qk"}> : () -> ()
    %cst_33 = arith.constant dense<0.000000e+00> : vector<16x16xf32>
    %75 = tpu.matmul %72, %73, %cst_33 {dimension_numbers = #tpu.dot_dimension_numbers<[1], [1], [0], [0], [0, 0, 1, 0], [], []>} : vector<16x8xf32>, vector<16x8xf32>, vector<16x16xf32> -> vector<16x16xf32>
    "tpu.trace_stop"() : () -> ()
    %76 = arith.addf %75, %14 : vector<16x16xf32>
    %cst_34 = arith.constant dense<0xFF800000> : vector<16xf32>
    %77 = vector.multi_reduction <maximumf>, %76, %cst_34 [1] : vector<16x16xf32> to vector<16xf32>
    %78 = vector.shape_cast %77 : vector<16xf32> to vector<16x1xf32>
    %79 = vector.broadcast %78 : vector<16x1xf32> to vector<16x16xf32>
    %80 = arith.subf %76, %79 : vector<16x16xf32>
    %81 = math.exp %80 : vector<16x16xf32>
    %cst_35 = arith.constant dense<0.000000e+00> : vector<16xf32>
    %82 = vector.multi_reduction <add>, %81, %cst_35 [1] : vector<16x16xf32> to vector<16xf32>
    %83 = vector.shape_cast %82 : vector<16xf32> to vector<16x1xf32>
    %84 = vector.broadcast %83 : vector<16x1xf32> to vector<16x16xf32>
    %85 = arith.divf %81, %84 : vector<16x16xf32>
    %cst_36 = arith.constant dense<0.000000e+00> : vector<16x8xf32>
    %86 = tpu.matmul %85, %74, %cst_36 {dimension_numbers = #tpu.dot_dimension_numbers<[1], [0], [0], [1], [0, 0, 1, 1], [], []>} : vector<16x16xf32>, vector<16x8xf32>, vector<16x8xf32> -> vector<16x8xf32>
    %87 = vector.extract_strided_slice %1 {offsets = [24, 0], sizes = [8, 32], strides = [1, 1]} : vector<32x32xf32> to vector<8x32xf32>
    %cst_37 = arith.constant dense<0.000000e+00> : vector<16x32xf32>
    %88 = tpu.matmul %86, %87, %cst_37 {dimension_numbers = #tpu.dot_dimension_numbers<[1], [0], [0], [1], [0, 0, 1, 1], [], []>} : vector<16x8xf32>, vector<8x32xf32>, vector<16x32xf32> -> vector<16x32xf32>
    %89 = arith.addf %71, %88 : vector<16x32xf32>
    %90 = vector.broadcast %6 : vector<1x32xf32> to vector<16x32xf32>
    %91 = arith.addf %89, %90 : vector<16x32xf32>
    %cst_38 = arith.constant dense<0.000000e+00> : vector<16x32xf32>
    %92 = tpu.matmul %91, %2, %cst_38 {dimension_numbers = #tpu.dot_dimension_numbers<[1], [0], [0], [1], [0, 0, 1, 1], [], []>} : vector<16x32xf32>, vector<32x32xf32>, vector<16x32xf32> -> vector<16x32xf32>
    %93 = vector.broadcast %7 : vector<1x32xf32> to vector<16x32xf32>
    %94 = arith.addf %92, %93 : vector<16x32xf32>
    %95 = arith.addf %91, %94 : vector<16x32xf32>
    %cst_39 = arith.constant dense<0.000000e+00> : vector<16xf32>
    %96 = vector.multi_reduction <add>, %95, %cst_39 [1] : vector<16x32xf32> to vector<16xf32>
    %97 = vector.shape_cast %96 : vector<16xf32> to vector<16x1xf32>
    %cst_40 = arith.constant 3.200000e+01 : f32
    %98 = vector.broadcast %cst_40 : f32 to vector<16x1xf32>
    %99 = arith.divf %97, %98 : vector<16x1xf32>
    %100 = vector.broadcast %99 : vector<16x1xf32> to vector<16x32xf32>
    %101 = arith.subf %95, %100 : vector<16x32xf32>
    %102 = arith.mulf %101, %101 : vector<16x32xf32>
    %cst_41 = arith.constant dense<0.000000e+00> : vector<16xf32>
    %103 = vector.multi_reduction <add>, %102, %cst_41 [1] : vector<16x32xf32> to vector<16xf32>
    %104 = vector.shape_cast %103 : vector<16xf32> to vector<16x1xf32>
    %cst_42 = arith.constant 0.0322580636 : f32
    %105 = vector.broadcast %cst_42 : f32 to vector<16x1xf32>
    %106 = arith.mulf %104, %105 : vector<16x1xf32>
    %107 = vector.broadcast %99 : vector<16x1xf32> to vector<16x32xf32>
    %108 = arith.subf %95, %107 : vector<16x32xf32>
    %109 = vector.broadcast %10 : vector<1x32xf32> to vector<16x32xf32>
    %110 = arith.mulf %109, %108 : vector<16x32xf32>
    %111 = math.sqrt %106 : vector<16x1xf32>
    %cst_43 = arith.constant 9.99999997E-7 : f32
    %112 = vector.broadcast %cst_43 : f32 to vector<16x1xf32>
    %113 = arith.addf %111, %112 : vector<16x1xf32>
    %114 = vector.broadcast %113 : vector<16x1xf32> to vector<16x32xf32>
    %115 = arith.divf %110, %114 : vector<16x32xf32>
    %116 = vector.broadcast %11 : vector<1x32xf32> to vector<16x32xf32>
    %117 = arith.addf %115, %116 : vector<16x32xf32>
    %cst_44 = arith.constant dense<0.000000e+00> : vector<16x64xf32>
    %118 = tpu.matmul %117, %3, %cst_44 {dimension_numbers = #tpu.dot_dimension_numbers<[1], [0], [0], [1], [0, 0, 1, 1], [], []>} : vector<16x32xf32>, vector<32x64xf32>, vector<16x64xf32> -> vector<16x64xf32>
    %119 = vector.broadcast %8 : vector<1x64xf32> to vector<16x64xf32>
    %120 = arith.addf %118, %119 : vector<16x64xf32>
    %cst_45 = arith.constant 5.000000e-01 : f32
    %121 = vector.broadcast %cst_45 : f32 to vector<16x64xf32>
    %122 = arith.mulf %121, %120 : vector<16x64xf32>
    %123 = arith.mulf %120, %120 : vector<16x64xf32>
    %124 = arith.mulf %120, %123 : vector<16x64xf32>
    %cst_46 = arith.constant 4.471500e-02 : f32
    %125 = vector.broadcast %cst_46 : f32 to vector<16x64xf32>
    %126 = arith.mulf %125, %124 : vector<16x64xf32>
    %127 = arith.addf %120, %126 : vector<16x64xf32>
    %cst_47 = arith.constant 0.797884583 : f32
    %128 = vector.broadcast %cst_47 : f32 to vector<16x64xf32>
    %129 = arith.mulf %128, %127 : vector<16x64xf32>
    %130 = math.tanh %129 : vector<16x64xf32>
    %cst_48 = arith.constant 1.000000e+00 : f32
    %131 = vector.broadcast %cst_48 : f32 to vector<16x64xf32>
    %132 = arith.addf %131, %130 : vector<16x64xf32>
    %133 = arith.mulf %122, %132 : vector<16x64xf32>
    %cst_49 = arith.constant dense<0.000000e+00> : vector<16x32xf32>
    %134 = tpu.matmul %133, %4, %cst_49 {dimension_numbers = #tpu.dot_dimension_numbers<[1], [0], [0], [1], [0, 0, 1, 1], [], []>} : vector<16x64xf32>, vector<64x32xf32>, vector<16x32xf32> -> vector<16x32xf32>
    %135 = vector.broadcast %9 : vector<1x32xf32> to vector<16x32xf32>
    %136 = arith.addf %134, %135 : vector<16x32xf32>
    %137 = arith.addf %117, %136 : vector<16x32xf32>
    %cst_50 = arith.constant dense<0.000000e+00> : vector<16xf32>
    %138 = vector.multi_reduction <add>, %137, %cst_50 [1] : vector<16x32xf32> to vector<16xf32>
    %139 = vector.shape_cast %138 : vector<16xf32> to vector<16x1xf32>
    %cst_51 = arith.constant 3.200000e+01 : f32
    %140 = vector.broadcast %cst_51 : f32 to vector<16x1xf32>
    %141 = arith.divf %139, %140 : vector<16x1xf32>
    %142 = vector.broadcast %141 : vector<16x1xf32> to vector<16x32xf32>
    %143 = arith.subf %137, %142 : vector<16x32xf32>
    %144 = arith.mulf %143, %143 : vector<16x32xf32>
    %cst_52 = arith.constant dense<0.000000e+00> : vector<16xf32>
    %145 = vector.multi_reduction <add>, %144, %cst_52 [1] : vector<16x32xf32> to vector<16xf32>
    %146 = vector.shape_cast %145 : vector<16xf32> to vector<16x1xf32>
    %cst_53 = arith.constant 0.0322580636 : f32
    %147 = vector.broadcast %cst_53 : f32 to vector<16x1xf32>
    %148 = arith.mulf %146, %147 : vector<16x1xf32>
    %149 = vector.broadcast %141 : vector<16x1xf32> to vector<16x32xf32>
    %150 = arith.subf %137, %149 : vector<16x32xf32>
    %151 = vector.broadcast %12 : vector<1x32xf32> to vector<16x32xf32>
    %152 = arith.mulf %151, %150 : vector<16x32xf32>
    %153 = math.sqrt %148 : vector<16x1xf32>
    %cst_54 = arith.constant 9.99999997E-7 : f32
    %154 = vector.broadcast %cst_54 : f32 to vector<16x1xf32>
    %155 = arith.addf %153, %154 : vector<16x1xf32>
    %156 = vector.broadcast %155 : vector<16x1xf32> to vector<16x32xf32>
    %157 = arith.divf %152, %156 : vector<16x32xf32>
    %158 = vector.broadcast %13 : vector<1x32xf32> to vector<16x32xf32>
    %159 = arith.addf %157, %158 : vector<16x32xf32>
    %c1_i32 = arith.constant 1 : i32
    %cst_55 = arith.constant dense<0.000000e+00> : vector<16x96xf32>
    %160 = tpu.matmul %159, %0, %cst_55 {dimension_numbers = #tpu.dot_dimension_numbers<[1], [0], [0], [1], [0, 0, 1, 1], [], []>} : vector<16x32xf32>, vector<32x96xf32>, vector<16x96xf32> -> vector<16x96xf32>
    %161 = vector.broadcast %5 : vector<1x96xf32> to vector<16x96xf32>
    %162 = arith.addf %160, %161 : vector<16x96xf32>
    %163 = vector.extract_strided_slice %162 {offsets = [0, 0], sizes = [16, 8], strides = [1, 1]} : vector<16x96xf32> to vector<16x8xf32>
    %164 = vector.extract_strided_slice %162 {offsets = [0, 32], sizes = [16, 8], strides = [1, 1]} : vector<16x96xf32> to vector<16x8xf32>
    %165 = vector.extract_strided_slice %162 {offsets = [0, 64], sizes = [16, 8], strides = [1, 1]} : vector<16x96xf32> to vector<16x8xf32>
    "tpu.trace_start"() <{level = 10 : i32, message = "qd,kd->qk"}> : () -> ()
    %cst_56 = arith.constant dense<0.000000e+00> : vector<16x16xf32>
    %166 = tpu.matmul %163, %164, %cst_56 {dimension_numbers = #tpu.dot_dimension_numbers<[1], [1], [0], [0], [0, 0, 1, 0], [], []>} : vector<16x8xf32>, vector<16x8xf32>, vector<16x16xf32> -> vector<16x16xf32>
    "tpu.trace_stop"() : () -> ()
    %167 = arith.addf %166, %14 : vector<16x16xf32>
    %cst_57 = arith.constant dense<0xFF800000> : vector<16xf32>
    %168 = vector.multi_reduction <maximumf>, %167, %cst_57 [1] : vector<16x16xf32> to vector<16xf32>
    %169 = vector.shape_cast %168 : vector<16xf32> to vector<16x1xf32>
    %170 = vector.broadcast %169 : vector<16x1xf32> to vector<16x16xf32>
    %171 = arith.subf %167, %170 : vector<16x16xf32>
    %172 = math.exp %171 : vector<16x16xf32>
    %cst_58 = arith.constant dense<0.000000e+00> : vector<16xf32>
    %173 = vector.multi_reduction <add>, %172, %cst_58 [1] : vector<16x16xf32> to vector<16xf32>
    %174 = vector.shape_cast %173 : vector<16xf32> to vector<16x1xf32>
    %175 = vector.broadcast %174 : vector<16x1xf32> to vector<16x16xf32>
    %176 = arith.divf %172, %175 : vector<16x16xf32>
    %cst_59 = arith.constant dense<0.000000e+00> : vector<16x8xf32>
    %177 = tpu.matmul %176, %165, %cst_59 {dimension_numbers = #tpu.dot_dimension_numbers<[1], [0], [0], [1], [0, 0, 1, 1], [], []>} : vector<16x16xf32>, vector<16x8xf32>, vector<16x8xf32> -> vector<16x8xf32>
    %178 = vector.extract_strided_slice %1 {offsets = [0, 0], sizes = [8, 32], strides = [1, 1]} : vector<32x32xf32> to vector<8x32xf32>
    %cst_60 = arith.constant dense<0.000000e+00> : vector<16x32xf32>
    %179 = tpu.matmul %177, %178, %cst_60 {dimension_numbers = #tpu.dot_dimension_numbers<[1], [0], [0], [1], [0, 0, 1, 1], [], []>} : vector<16x8xf32>, vector<8x32xf32>, vector<16x32xf32> -> vector<16x32xf32>
    %180 = vector.extract_strided_slice %162 {offsets = [0, 8], sizes = [16, 8], strides = [1, 1]} : vector<16x96xf32> to vector<16x8xf32>
    %181 = vector.extract_strided_slice %162 {offsets = [0, 40], sizes = [16, 8], strides = [1, 1]} : vector<16x96xf32> to vector<16x8xf32>
    %182 = vector.extract_strided_slice %162 {offsets = [0, 72], sizes = [16, 8], strides = [1, 1]} : vector<16x96xf32> to vector<16x8xf32>
    "tpu.trace_start"() <{level = 10 : i32, message = "qd,kd->qk"}> : () -> ()
    %cst_61 = arith.constant dense<0.000000e+00> : vector<16x16xf32>
    %183 = tpu.matmul %180, %181, %cst_61 {dimension_numbers = #tpu.dot_dimension_numbers<[1], [1], [0], [0], [0, 0, 1, 0], [], []>} : vector<16x8xf32>, vector<16x8xf32>, vector<16x16xf32> -> vector<16x16xf32>
    "tpu.trace_stop"() : () -> ()
    %184 = arith.addf %183, %14 : vector<16x16xf32>
    %cst_62 = arith.constant dense<0xFF800000> : vector<16xf32>
    %185 = vector.multi_reduction <maximumf>, %184, %cst_62 [1] : vector<16x16xf32> to vector<16xf32>
    %186 = vector.shape_cast %185 : vector<16xf32> to vector<16x1xf32>
    %187 = vector.broadcast %186 : vector<16x1xf32> to vector<16x16xf32>
    %188 = arith.subf %184, %187 : vector<16x16xf32>
    %189 = math.exp %188 : vector<16x16xf32>
    %cst_63 = arith.constant dense<0.000000e+00> : vector<16xf32>
    %190 = vector.multi_reduction <add>, %189, %cst_63 [1] : vector<16x16xf32> to vector<16xf32>
    %191 = vector.shape_cast %190 : vector<16xf32> to vector<16x1xf32>
    %192 = vector.broadcast %191 : vector<16x1xf32> to vector<16x16xf32>
    %193 = arith.divf %189, %192 : vector<16x16xf32>
    %cst_64 = arith.constant dense<0.000000e+00> : vector<16x8xf32>
    %194 = tpu.matmul %193, %182, %cst_64 {dimension_numbers = #tpu.dot_dimension_numbers<[1], [0], [0], [1], [0, 0, 1, 1], [], []>} : vector<16x16xf32>, vector<16x8xf32>, vector<16x8xf32> -> vector<16x8xf32>
    %195 = vector.extract_strided_slice %1 {offsets = [8, 0], sizes = [8, 32], strides = [1, 1]} : vector<32x32xf32> to vector<8x32xf32>
    %cst_65 = arith.constant dense<0.000000e+00> : vector<16x32xf32>
    %196 = tpu.matmul %194, %195, %cst_65 {dimension_numbers = #tpu.dot_dimension_numbers<[1], [0], [0], [1], [0, 0, 1, 1], [], []>} : vector<16x8xf32>, vector<8x32xf32>, vector<16x32xf32> -> vector<16x32xf32>
    %197 = arith.addf %179, %196 : vector<16x32xf32>
    %198 = vector.extract_strided_slice %162 {offsets = [0, 16], sizes = [16, 8], strides = [1, 1]} : vector<16x96xf32> to vector<16x8xf32>
    %199 = vector.extract_strided_slice %162 {offsets = [0, 48], sizes = [16, 8], strides = [1, 1]} : vector<16x96xf32> to vector<16x8xf32>
    %200 = vector.extract_strided_slice %162 {offsets = [0, 80], sizes = [16, 8], strides = [1, 1]} : vector<16x96xf32> to vector<16x8xf32>
    "tpu.trace_start"() <{level = 10 : i32, message = "qd,kd->qk"}> : () -> ()
    %cst_66 = arith.constant dense<0.000000e+00> : vector<16x16xf32>
    %201 = tpu.matmul %198, %199, %cst_66 {dimension_numbers = #tpu.dot_dimension_numbers<[1], [1], [0], [0], [0, 0, 1, 0], [], []>} : vector<16x8xf32>, vector<16x8xf32>, vector<16x16xf32> -> vector<16x16xf32>
    "tpu.trace_stop"() : () -> ()
    %202 = arith.addf %201, %14 : vector<16x16xf32>
    %cst_67 = arith.constant dense<0xFF800000> : vector<16xf32>
    %203 = vector.multi_reduction <maximumf>, %202, %cst_67 [1] : vector<16x16xf32> to vector<16xf32>
    %204 = vector.shape_cast %203 : vector<16xf32> to vector<16x1xf32>
    %205 = vector.broadcast %204 : vector<16x1xf32> to vector<16x16xf32>
    %206 = arith.subf %202, %205 : vector<16x16xf32>
    %207 = math.exp %206 : vector<16x16xf32>
    %cst_68 = arith.constant dense<0.000000e+00> : vector<16xf32>
    %208 = vector.multi_reduction <add>, %207, %cst_68 [1] : vector<16x16xf32> to vector<16xf32>
    %209 = vector.shape_cast %208 : vector<16xf32> to vector<16x1xf32>
    %210 = vector.broadcast %209 : vector<16x1xf32> to vector<16x16xf32>
    %211 = arith.divf %207, %210 : vector<16x16xf32>
    %cst_69 = arith.constant dense<0.000000e+00> : vector<16x8xf32>
    %212 = tpu.matmul %211, %200, %cst_69 {dimension_numbers = #tpu.dot_dimension_numbers<[1], [0], [0], [1], [0, 0, 1, 1], [], []>} : vector<16x16xf32>, vector<16x8xf32>, vector<16x8xf32> -> vector<16x8xf32>
    %213 = vector.extract_strided_slice %1 {offsets = [16, 0], sizes = [8, 32], strides = [1, 1]} : vector<32x32xf32> to vector<8x32xf32>
    %cst_70 = arith.constant dense<0.000000e+00> : vector<16x32xf32>
    %214 = tpu.matmul %212, %213, %cst_70 {dimension_numbers = #tpu.dot_dimension_numbers<[1], [0], [0], [1], [0, 0, 1, 1], [], []>} : vector<16x8xf32>, vector<8x32xf32>, vector<16x32xf32> -> vector<16x32xf32>
    %215 = arith.addf %197, %214 : vector<16x32xf32>
    %216 = vector.extract_strided_slice %162 {offsets = [0, 24], sizes = [16, 8], strides = [1, 1]} : vector<16x96xf32> to vector<16x8xf32>
    %217 = vector.extract_strided_slice %162 {offsets = [0, 56], sizes = [16, 8], strides = [1, 1]} : vector<16x96xf32> to vector<16x8xf32>
    %218 = vector.extract_strided_slice %162 {offsets = [0, 88], sizes = [16, 8], strides = [1, 1]} : vector<16x96xf32> to vector<16x8xf32>
    "tpu.trace_start"() <{level = 10 : i32, message = "qd,kd->qk"}> : () -> ()
    %cst_71 = arith.constant dense<0.000000e+00> : vector<16x16xf32>
    %219 = tpu.matmul %216, %217, %cst_71 {dimension_numbers = #tpu.dot_dimension_numbers<[1], [1], [0], [0], [0, 0, 1, 0], [], []>} : vector<16x8xf32>, vector<16x8xf32>, vector<16x16xf32> -> vector<16x16xf32>
    "tpu.trace_stop"() : () -> ()
    %220 = arith.addf %219, %14 : vector<16x16xf32>
    %cst_72 = arith.constant dense<0xFF800000> : vector<16xf32>
    %221 = vector.multi_reduction <maximumf>, %220, %cst_72 [1] : vector<16x16xf32> to vector<16xf32>
    %222 = vector.shape_cast %221 : vector<16xf32> to vector<16x1xf32>
    %223 = vector.broadcast %222 : vector<16x1xf32> to vector<16x16xf32>
    %224 = arith.subf %220, %223 : vector<16x16xf32>
    %225 = math.exp %224 : vector<16x16xf32>
    %cst_73 = arith.constant dense<0.000000e+00> : vector<16xf32>
    %226 = vector.multi_reduction <add>, %225, %cst_73 [1] : vector<16x16xf32> to vector<16xf32>
    %227 = vector.shape_cast %226 : vector<16xf32> to vector<16x1xf32>
    %228 = vector.broadcast %227 : vector<16x1xf32> to vector<16x16xf32>
    %229 = arith.divf %225, %228 : vector<16x16xf32>
    %cst_74 = arith.constant dense<0.000000e+00> : vector<16x8xf32>
    %230 = tpu.matmul %229, %218, %cst_74 {dimension_numbers = #tpu.dot_dimension_numbers<[1], [0], [0], [1], [0, 0, 1, 1], [], []>} : vector<16x16xf32>, vector<16x8xf32>, vector<16x8xf32> -> vector<16x8xf32>
    %231 = vector.extract_strided_slice %1 {offsets = [24, 0], sizes = [8, 32], strides = [1, 1]} : vector<32x32xf32> to vector<8x32xf32>
    %cst_75 = arith.constant dense<0.000000e+00> : vector<16x32xf32>
    %232 = tpu.matmul %230, %231, %cst_75 {dimension_numbers = #tpu.dot_dimension_numbers<[1], [0], [0], [1], [0, 0, 1, 1], [], []>} : vector<16x8xf32>, vector<8x32xf32>, vector<16x32xf32> -> vector<16x32xf32>
    %233 = arith.addf %215, %232 : vector<16x32xf32>
    %234 = vector.broadcast %6 : vector<1x32xf32> to vector<16x32xf32>
    %235 = arith.addf %233, %234 : vector<16x32xf32>
    %cst_76 = arith.constant dense<0.000000e+00> : vector<16x32xf32>
    %236 = tpu.matmul %235, %2, %cst_76 {dimension_numbers = #tpu.dot_dimension_numbers<[1], [0], [0], [1], [0, 0, 1, 1], [], []>} : vector<16x32xf32>, vector<32x32xf32>, vector<16x32xf32> -> vector<16x32xf32>
    %237 = vector.broadcast %7 : vector<1x32xf32> to vector<16x32xf32>
    %238 = arith.addf %236, %237 : vector<16x32xf32>
    %239 = arith.addf %235, %238 : vector<16x32xf32>
    %cst_77 = arith.constant dense<0.000000e+00> : vector<16xf32>
    %240 = vector.multi_reduction <add>, %239, %cst_77 [1] : vector<16x32xf32> to vector<16xf32>
    %241 = vector.shape_cast %240 : vector<16xf32> to vector<16x1xf32>
    %cst_78 = arith.constant 3.200000e+01 : f32
    %242 = vector.broadcast %cst_78 : f32 to vector<16x1xf32>
    %243 = arith.divf %241, %242 : vector<16x1xf32>
    %244 = vector.broadcast %243 : vector<16x1xf32> to vector<16x32xf32>
    %245 = arith.subf %239, %244 : vector<16x32xf32>
    %246 = arith.mulf %245, %245 : vector<16x32xf32>
    %cst_79 = arith.constant dense<0.000000e+00> : vector<16xf32>
    %247 = vector.multi_reduction <add>, %246, %cst_79 [1] : vector<16x32xf32> to vector<16xf32>
    %248 = vector.shape_cast %247 : vector<16xf32> to vector<16x1xf32>
    %cst_80 = arith.constant 0.0322580636 : f32
    %249 = vector.broadcast %cst_80 : f32 to vector<16x1xf32>
    %250 = arith.mulf %248, %249 : vector<16x1xf32>
    %251 = vector.broadcast %243 : vector<16x1xf32> to vector<16x32xf32>
    %252 = arith.subf %239, %251 : vector<16x32xf32>
    %253 = vector.broadcast %10 : vector<1x32xf32> to vector<16x32xf32>
    %254 = arith.mulf %253, %252 : vector<16x32xf32>
    %255 = math.sqrt %250 : vector<16x1xf32>
    %cst_81 = arith.constant 9.99999997E-7 : f32
    %256 = vector.broadcast %cst_81 : f32 to vector<16x1xf32>
    %257 = arith.addf %255, %256 : vector<16x1xf32>
    %258 = vector.broadcast %257 : vector<16x1xf32> to vector<16x32xf32>
    %259 = arith.divf %254, %258 : vector<16x32xf32>
    %260 = vector.broadcast %11 : vector<1x32xf32> to vector<16x32xf32>
    %261 = arith.addf %259, %260 : vector<16x32xf32>
    %cst_82 = arith.constant dense<0.000000e+00> : vector<16x64xf32>
    %262 = tpu.matmul %261, %3, %cst_82 {dimension_numbers = #tpu.dot_dimension_numbers<[1], [0], [0], [1], [0, 0, 1, 1], [], []>} : vector<16x32xf32>, vector<32x64xf32>, vector<16x64xf32> -> vector<16x64xf32>
    %263 = vector.broadcast %8 : vector<1x64xf32> to vector<16x64xf32>
    %264 = arith.addf %262, %263 : vector<16x64xf32>
    %cst_83 = arith.constant 5.000000e-01 : f32
    %265 = vector.broadcast %cst_83 : f32 to vector<16x64xf32>
    %266 = arith.mulf %265, %264 : vector<16x64xf32>
    %267 = arith.mulf %264, %264 : vector<16x64xf32>
    %268 = arith.mulf %264, %267 : vector<16x64xf32>
    %cst_84 = arith.constant 4.471500e-02 : f32
    %269 = vector.broadcast %cst_84 : f32 to vector<16x64xf32>
    %270 = arith.mulf %269, %268 : vector<16x64xf32>
    %271 = arith.addf %264, %270 : vector<16x64xf32>
    %cst_85 = arith.constant 0.797884583 : f32
    %272 = vector.broadcast %cst_85 : f32 to vector<16x64xf32>
    %273 = arith.mulf %272, %271 : vector<16x64xf32>
    %274 = math.tanh %273 : vector<16x64xf32>
    %cst_86 = arith.constant 1.000000e+00 : f32
    %275 = vector.broadcast %cst_86 : f32 to vector<16x64xf32>
    %276 = arith.addf %275, %274 : vector<16x64xf32>
    %277 = arith.mulf %266, %276 : vector<16x64xf32>
    %cst_87 = arith.constant dense<0.000000e+00> : vector<16x32xf32>
    %278 = tpu.matmul %277, %4, %cst_87 {dimension_numbers = #tpu.dot_dimension_numbers<[1], [0], [0], [1], [0, 0, 1, 1], [], []>} : vector<16x64xf32>, vector<64x32xf32>, vector<16x32xf32> -> vector<16x32xf32>
    %279 = vector.broadcast %9 : vector<1x32xf32> to vector<16x32xf32>
    %280 = arith.addf %278, %279 : vector<16x32xf32>
    %281 = arith.addf %261, %280 : vector<16x32xf32>
    %cst_88 = arith.constant dense<0.000000e+00> : vector<16xf32>
    %282 = vector.multi_reduction <add>, %281, %cst_88 [1] : vector<16x32xf32> to vector<16xf32>
    %283 = vector.shape_cast %282 : vector<16xf32> to vector<16x1xf32>
    %cst_89 = arith.constant 3.200000e+01 : f32
    %284 = vector.broadcast %cst_89 : f32 to vector<16x1xf32>
    %285 = arith.divf %283, %284 : vector<16x1xf32>
    %286 = vector.broadcast %285 : vector<16x1xf32> to vector<16x32xf32>
    %287 = arith.subf %281, %286 : vector<16x32xf32>
    %288 = arith.mulf %287, %287 : vector<16x32xf32>
    %cst_90 = arith.constant dense<0.000000e+00> : vector<16xf32>
    %289 = vector.multi_reduction <add>, %288, %cst_90 [1] : vector<16x32xf32> to vector<16xf32>
    %290 = vector.shape_cast %289 : vector<16xf32> to vector<16x1xf32>
    %cst_91 = arith.constant 0.0322580636 : f32
    %291 = vector.broadcast %cst_91 : f32 to vector<16x1xf32>
    %292 = arith.mulf %290, %291 : vector<16x1xf32>
    %293 = vector.broadcast %285 : vector<16x1xf32> to vector<16x32xf32>
    %294 = arith.subf %281, %293 : vector<16x32xf32>
    %295 = vector.broadcast %12 : vector<1x32xf32> to vector<16x32xf32>
    %296 = arith.mulf %295, %294 : vector<16x32xf32>
    %297 = math.sqrt %292 : vector<16x1xf32>
    %cst_92 = arith.constant 9.99999997E-7 : f32
    %298 = vector.broadcast %cst_92 : f32 to vector<16x1xf32>
    %299 = arith.addf %297, %298 : vector<16x1xf32>
    %300 = vector.broadcast %299 : vector<16x1xf32> to vector<16x32xf32>
    %301 = arith.divf %296, %300 : vector<16x32xf32>
    %302 = vector.broadcast %13 : vector<1x32xf32> to vector<16x32xf32>
    %303 = arith.addf %301, %302 : vector<16x32xf32>
    %c0_93 = arith.constant 0 : index
    %c0_94 = arith.constant 0 : index
    %304 = vector.load %arg3[%c0_93, %c0_94] : memref<16x32xf32, #tpu.memory_space<vmem>>, vector<16x32xf32>
    tpu.vector_store %arg3[%c0_93, %c0_94], %303 {strides = array<i32>} : memref<16x32xf32, #tpu.memory_space<vmem>>, vector<16x32xf32>,
    return
  }
}

</mosaic_0001>

<bundles_post_ra>
// kernel: transformer_forward.1
= control target key start
LH: loop header
LB: loop body
LE: loop exit
PB: predicated region body
PF: predicated region fallthrough
CT: control target
= control target key end

     0   :  { %8 = vsyncpa [#allocation3], 0  ;;  %s4517_s0 = inlined_call_operand.hbm [shape: f32[16,32], index: 0, kind: input, shape index: {}]   ;;  %s4518_s1 = inlined_call_operand.hbm [shape: f32[16,16], index: 1, kind: input, shape index: {}]   ;;  %s4519_s2 = inlined_call_operand.hbm [shape: f32[208,128], index: 2, kind: input, shape index: {}]   ;;  %s4520_s3 = inlined_call_operand.hbm [shape: f32[16,32], index: 3, kind: output, shape index: {}]  }
   0x1   :  { %9 = vsyncpa [#allocation6], 0 }
   0x2   :  { %10 = vsyncpa [#allocation4], 0  ;;  %s3976_s12 = smov [#allocation5]   ;;  %s3977_s14 = smov [#allocation2]  }
   0x3   :  { %s28_s13 = sshll.u32 %s3976_s12, 4  ;;  %s16_s15 = sshll.u32 %s3977_s14, 4  ;;  %s29_s13 = int_to_ptr.vmem [resolvable:$true] %s28_s13  ;;  %s17_s15 = int_to_ptr.vmem [resolvable:$true] %s16_s15 }
   0x4   :  { %s3898_s16 = scalar_lea.vmem %s29_s13, 256  ;;  %p3903_p1 = scmp.lt.s32.totalorder %s29_s13, %s29_s13 }
   0x5   :  { %p3899_p0 = scmp.ne.s32.totalorder %s29_s13, %s3898_s16  ;;  %p3904_p2 = scmp.lt.s32.totalorder %s3898_s16, %s3898_s16 }
   0x7   :  { %p3905_p3 = por %p3904_p2, %p3903_p1 }
   0x9   :  { %p3906_p4 = pnand %p3905_p3, %p3899_p0 }
   0xb   :  { %3909 = shalt.err (!%p3906_p4)
}
   0xc   :  { %s3978_s17 = smov 128   ;;  %s3979_s18 = smov 8  }
   0xd   :  { %34 = dma.hbm_to_vmem [thread:$0]  %s4518_s1, 256, %s29_s13, [#allocation6], %s3978_s17, %s3978_s17, %s3979_s18  }
   0xe   :  { %s3918_s21 = scalar_lea.vmem %s17_s15, 256  ;;  %p3923_p6 = scmp.lt.s32.totalorder %s17_s15, %s17_s15 }
   0xf   :  { %p3919_p5 = scmp.ne.s32.totalorder %s17_s15, %s3918_s21  ;;  %p3924_p7 = scmp.lt.s32.totalorder %s3918_s21, %s3918_s21 }
  0x11   :  { %p3925_p8 = por %p3924_p7, %p3923_p6 }
  0x13   :  { %p3926_p9 = pnand %p3925_p8, %p3919_p5 }
  0x15   :  { %3929 = shalt.err (!%p3926_p9)
}
  0x16   :  { %22 = dma.hbm_to_vmem [thread:$0]  %s4517_s0, 256, %s17_s15, [#allocation3], %s3978_s17, %s3978_s17, %s3979_s18  }
  0x17   :  { %s3980_s24 = smov [#allocation7]  }
  0x18   :  { %s40_s25 = sshll.u32 %s3980_s24, 4  ;;  %s41_s25 = int_to_ptr.vmem [resolvable:$true] %s40_s25 }
  0x19   :  { %s3938_s26 = scalar_lea.vmem %s41_s25, 3328  ;;  %p3943_p11 = scmp.lt.s32.totalorder %s41_s25, %s41_s25 }
  0x1a   :  { %p3939_p10 = scmp.ne.s32.totalorder %s41_s25, %s3938_s26  ;;  %p3944_p12 = scmp.lt.s32.totalorder %s3938_s26, %s3938_s26 }
  0x1c   :  { %p3945_p13 = por %p3944_p12, %p3943_p11 }
  0x1e   :  { %p3946_p0 = pnand %p3945_p13, %p3939_p10 }
  0x20   :  { %3949 = shalt.err (!%p3946_p0)
}
  0x21   :  { %46 = dma.hbm_to_vmem [thread:$0]  %s4519_s2, 3328, %s41_s25, [#allocation6], %s3978_s17, %s3978_s17, %s3979_s18  }
  0x22   :  { %3970 = dma.done.wait [#allocation3], 256  }
  0x23   :  { %3971 = vsyncadd [#allocation3], 4294967040 }
  0x24   :  { %3972 = dma.done.wait [#allocation6], 3584  }
  0x25   :  { %3973 = vsyncadd [#allocation6], 4294963712  ;;  %vm97_vm0 = vcmask 261120   ;;  %v4031_v0 = vld [vmem:[#allocation7 + $0x18] sm:$0xff]  ;;  %v4033_v1 = vld [vmem:[#allocation7 + $0x10] sm:$0xff]  ;;  %vm185_vm1 = vcmask 64512  }
  0x26   :  { %3511 = vmatprep.subr.mxu1 %v4031_v0  ;;  %v91_v2 = vld [vmem:[#allocation2] sm:$0xff]  ;;  %v4037_v3 = vld [vmem:[#allocation7 + $0x8] sm:$0xff]  ;;  %s3981_s0 = smov 88   ;;  %s3982_s2 = smov 96   ;;  %v4083_v17 = vld [vmem:[#allocation5 + $0x8] sm:$0xff]  ;;  %vm269_vm2 = vcmask 130048  }
  0x27   :  { %3512 = vmatpush3.msra.mxu1 %v4031_v0  ;;  %3519 = vmatprep.mubr.msk.f32.mxu1 %vm97_vm0, %v91_v2  ;;  %v4042_v4 = vld [vmem:[#allocation7] sm:$0xff]  ;;  %v92_v5 = vld [vmem:[#allocation2 + $0x8] sm:$0xff]  ;;  %s3983_s28 = smov 120   ;;  %v4085_v19 = vld [vmem:[#allocation5] sm:$0xff]  ;;  %s3984_s29 = smov 64   ;;  %vm1560_vm7 = vcmask 523264  }
  0x28   :  { %3513 = vmatprep.subr.mxu1 %v4033_v1  ;;  %v4049_v6 = vld [vmem:[#allocation7 + $0xc0] ss:$0 sm:$0xff]  ;;  %s3985_s30 = smov 56   ;;  %s3986_s4 = smov 80   ;;  %v4125_v63 = vld [vmem:[#allocation7 + $0x28] sm:$0xff] }
  0x29   :  { %3514 = vmatpush3.msra.mxu1 %v4033_v1  ;;  %s3987_s5 = smov 112   ;;  %s3988_s6 = smov 72  }
  0x2a   :  { %3515 = vmatprep.subr.mxu1 %v4037_v3  ;;  %s3989_s7 = smov 104   ;;  %s3990_s8 = smov 48  }
  0x2b   :  { %3516 = vmatpush3.msra.mxu1 %v4037_v3  ;;  %s3991_s9 = smov 40   ;;  %s3992_s10 = smov [#allocation8]  }
  0x2c   :  { %3517 = vmatprep.subr.mxu1 %v4042_v4  ;;  %s3265_s11 = sshll.u32 %s3992_s10, 4  ;;  %s3266_s11 = int_to_ptr.vmem [resolvable:$true] %s3265_s11 }
  0x2d   :  { %3518 = vmatpush3.msra.mxu1 %v4042_v4  ;;  %s3950_s12 = scalar_lea.vmem %s3266_s11, 256  ;;  %p3955_p2 = scmp.lt.s32.totalorder %s3266_s11, %s3266_s11 }
  0x2e   :  { %3520 = vmatmul.mubr.msk.f32.vlgmr.msra.gmra.mxu1 %vm97_vm0, %v92_v5  ;;  %p3951_p1 = scmp.ne.s32.totalorder %s3266_s11, %s3950_s12  ;;  %p3956_p3 = scmp.lt.s32.totalorder %s3950_s12, %s3950_s12 }
  0x30   :  { %p3957_p4 = por %p3956_p3, %p3955_p2 }
  0x32   :  { %p3958_p5 = pnand %p3957_p4, %p3951_p1 }
  0xee   :  { %v3521_v7 = vpop.f32.mrf.mxu1 }
  0xef   :  { %v4052_v8 = vadd.f32 %v3521_v7, %v4049_v6 }
  0xf0   :  { %v170_v9 = vpop.f32.mrf.mxu1 }
  0xf1   :  { %v4055_v10 = vadd.f32 %v4049_v6, %v170_v9  ;;  %385 = vrot.lane.b32.xlu1 %v4052_v8, %s3981_s0  ;;  %183 = vrot.lane.b32.xlu0 %v4052_v8, %s3982_s2 }
  0xf3   :  { %3526 = vmatprep.mubr.msk.f32.mxu1 %vm185_vm1, %v4055_v10 }
  0xf5   :  { %383 = vrot.lane.b32.xlu1 %v4055_v10, %s3981_s0  ;;  %181 = vrot.lane.b32.xlu0 %v4055_v10, %s3982_s2 }
  0xf9   :  { %381 = vrot.lane.b32.xlu1 %v4052_v8, %s3983_s28  ;;  %379 = vrot.lane.b32.xlu0 %v4055_v10, %s3983_s28 }
 0x163   :  { %v184_v11 = vpop.permute.xlu0 %183  ;;  %v386_v12 = vpop.permute.xlu1 %385 }
 0x164   :  { %3522 = vmatprep.subr.msk.mxu1 %vm185_vm1, %v184_v11 }
 0x165   :  { %3523 = vmatpush3.xpose.msk.msra.mxu1 %vm185_vm1, %v184_v11 }
 0x167   :  { %v182_v13 = vpop.permute.xlu0 %181  ;;  %v384_v15 = vpop.permute.xlu1 %383 }
 0x168   :  { %3524 = vmatprep.subr.msk.mxu1 %vm185_vm1, %v182_v13 }
 0x169   :  { %3525 = vmatpush3.xpose.msk.msra.mxu1 %vm185_vm1, %v182_v13 }
 0x16a   :  { %3536 = vmatprep.subr.msk.mxu1 %vm185_vm1, %v386_v12 }
 0x16b   :  { %v380_v14 = vpop.permute.xlu0 %379  ;;  %v382_v16 = vpop.permute.xlu1 %381 }
 0x16c   :  { %3527 = vmatmul.mubr.msk.f32.vlgmr.msra.gmra.mxu1 %vm185_vm1, %v4052_v8 }
 0x16d   :  { %3537 = vmatpush3.xpose.msk.msra.mxu1 %vm185_vm1, %v386_v12  ;;  %3540 = vmatprep.mubr.msk.f32.mxu1 %vm185_vm1, %v380_v14  ;;  %v4132_v12 = vld [vmem:[#allocation7 + $0x20] sm:$0xff] }
 0x16e   :  { %3538 = vmatprep.subr.msk.mxu1 %vm185_vm1, %v384_v15 }
 0x171   :  { %3539 = vmatpush3.xpose.msk.msra.mxu1 %vm185_vm1, %v384_v15 }
 0x172   :  { %3555 = vmatprep.subr.mxu1 %v4132_v12 }
 0x174   :  { %3541 = vmatmul.mubr.msk.f32.vlgmr.msra.gmra.mxu1 %vm185_vm1, %v382_v16 }
 0x175   :  { %3556 = vmatpush3.msra.mxu1 %v4132_v12 }
 0x22c   :  { %v3528_v18 = vpop.f32.mrf.mxu1 }
 0x22d   :  { %v266_v20 = vadd.f32 %v3528_v18, %v4083_v17 }
 0x22e   :  { %v260_v21 = vpop.f32.mrf.mxu1 }
 0x22f   :  { %v261_v22 = vadd.f32 %v260_v21, %v4085_v19  ;;  %v273_v23 = vsel %vm269_vm2, %v266_v20, -inf }
 0x230   :  { %274 = vmax.xlane.f32.xlu1 %v273_v23 }
 0x231   :  { %v270_v24 = vsel %vm269_vm2, %v261_v22, -inf }
 0x232   :  { %271 = vmax.xlane.f32.xlu0 %v270_v24 }
 0x234   :  { %v3542_v25 = vpop.f32.mrf.mxu1 }
 0x235   :  { %v467_v28 = vadd.f32 %v3542_v25, %v4083_v17 }
 0x236   :  { %v461_v26 = vpop.f32.mrf.mxu1 }
 0x237   :  { %v462_v27 = vadd.f32 %v461_v26, %v4085_v19  ;;  %v473_v30 = vsel %vm269_vm2, %v467_v28, -inf }
 0x239   :  { %v470_v29 = vsel %vm269_vm2, %v462_v27, -inf }
 0x23a   :  { %471 = vmax.xlane.f32.xlu0 %v470_v29 }
 0x23e   :  { %474 = vmax.xlane.f32.xlu0 %v473_v30 }
 0x241   :  { %294 = vrot.lane.b32.xlu1 %v4052_v8, %s3984_s29 }
 0x2b9   :  { %v275_v31 = vpop.xlane.xlu1 %274 }
 0x2ba   :  { %v277_v32 = vsub.f32 %v266_v20, %v275_v31 }
 0x2bb   :  { %v272_v33 = vpop.xlane.xlu0 %271 }
 0x2bc   :  { %v280_v34 = vmul.f32 1.442695, %v277_v32  ;;  %v276_v35 = vsub.f32 %v261_v22, %v272_v33 }
 0x2bd   :  { %v295_v36 = vpop.permute.xlu1 %294 }
 0x2be   :  { %3784 = vpow2.f32 %v280_v34  ;;  %v278_v37 = vmul.f32 1.442695, %v276_v35  ;;  %3529 = vmatprep.subr.mxu0 %v295_v36 }
 0x2bf   :  { %3530 = vmatpush3.msra.mxu0 %v295_v36 }
 0x2c0   :  { %3786 = vpow2.f32 %v278_v37 }
 0x2c3   :  { %v472_v38 = vpop.xlane.xlu0 %471 }
 0x2c4   :  { %v476_v48 = vsub.f32 %v462_v27, %v472_v38 }
 0x2c6   :  { %v478_v49 = vmul.f32 1.442695, %v476_v48 }
 0x2c7   :  { %v475_v39 = vpop.xlane.xlu0 %474 }
 0x2c8   :  { %v477_v40 = vsub.f32 %v467_v28, %v475_v39 }
 0x2ca   :  { %v480_v41 = vmul.f32 1.442695, %v477_v40 }
 0x2cb   :  { %v3785_v42 = vpop.eup %3784 }
 0x2cc   :  { %3788 = vpow2.f32 %v480_v41  ;;  %v285_v43 = vsel %vm269_vm2, %v3785_v42, 0.0 }
 0x2cd   :  { %v3787_v44 = vpop.eup %3786  ;;  %286 = vadd.xlane.f32.xlu0 %v285_v43  ;;  %3790 = vpow2.f32 %v478_v49 }
 0x2ce   :  { %v282_v45 = vsel %vm269_vm2, %v3787_v44, 0.0 }
 0x2cf   :  { %283 = vadd.xlane.f32.xlu1 %v282_v45 }
 0x2d9   :  { %v3789_v46 = vpop.eup %3788 }
 0x2da   :  { %v485_v47 = vsel %vm269_vm2, %v3789_v46, 0.0  ;;  %v3791_v50 = vpop.eup %3790 }
 0x2db   :  { %486 = vadd.xlane.f32.xlu0 %v485_v47  ;;  %v482_v51 = vsel %vm269_vm2, %v3791_v50, 0.0 }
 0x2e0   :  { %494 = vrot.lane.b32.xlu1 %v4052_v8, %s3985_s30 }
 0x2f1   :  { %292 = vrot.lane.b32.xlu0 %v4055_v10, %s3984_s29 }
 0x2f5   :  { %747 = vrot.lane.b32.xlu0 %v4052_v8, %s3986_s4 }
 0x2f9   :  { %741 = vrot.lane.b32.xlu0 %v4055_v10, %s3987_s5 }
 0x2fd   :  { %1030 = vrot.lane.b32.xlu0 %v4052_v8, %s3988_s6 }
 0x301   :  { %1024 = vrot.lane.b32.xlu0 %v4055_v10, %s3989_s7 }
 0x304   :  { %483 = vadd.xlane.f32.xlu1 %v482_v51 }
 0x315   :  { %492 = vrot.lane.b32.xlu1 %v4055_v10, %s3985_s30 }
 0x319   :  { %745 = vrot.lane.b32.xlu1 %v4055_v10, %s3986_s4 }
 0x31d   :  { %743 = vrot.lane.b32.xlu1 %v4052_v8, %s3987_s5 }
 0x321   :  { %1028 = vrot.lane.b32.xlu1 %v4055_v10, %s3988_s6 }
 0x325   :  { %1026 = vrot.lane.b32.xlu1 %v4052_v8, %s3989_s7 }
 0x356   :  { %v287_v52 = vpop.xlane.xlu0 %286 }
 0x357   :  { %3792 = vrcp.f32 %v287_v52 }
 0x358   :  { %v284_v53 = vpop.xlane.xlu1 %283 }
 0x359   :  { %3794 = vrcp.f32 %v284_v53 }
 0x35c   :  { %v495_v60 = vpop.permute.xlu1 %494 }
 0x364   :  { %v487_v54 = vpop.xlane.xlu0 %486  ;;  %v3793_v55 = vpop.eup %3792 }
 0x365   :  { %v291_v59 = vmul.f32 %v3793_v55, %v3785_v42  ;;  %3796 = vrcp.f32 %v487_v54 }
 0x366   :  { %v3795_v56 = vpop.eup %3794 }
 0x367   :  { %v289_v57 = vmul.f32 %v3795_v56, %v3787_v44 }
 0x368   :  { %v293_v58 = vpop.permute.xlu0 %292 }
 0x369   :  { %3531 = vmatprep.subr.mxu0 %v293_v58  ;;  %3533 = vmatprep.mubr.msk.f32.mxu0 %vm269_vm2, %v289_v57 }
 0x36a   :  { %3532 = vmatpush3.msra.mxu0 %v293_v58 }
 0x36b   :  { %3534 = vmatmul.mubr.msk.f32.vlgmr.msra.gmra.mxu0 %vm269_vm2, %v291_v59  ;;  %3543 = vmatprep.subr.mxu0 %v495_v60 }
 0x36c   :  { %3544 = vmatpush3.msra.mxu0 %v495_v60  ;;  %v748_v11 = vpop.permute.xlu0 %747 }
 0x370   :  { %v742_v15 = vpop.permute.xlu0 %741 }
 0x372   :  { %v3797_v2 = vpop.eup %3796 }
 0x373   :  { %v491_v9 = vmul.f32 %v3797_v2, %v3789_v46 }
 0x374   :  { %v1031_v21 = vpop.permute.xlu0 %1030 }
 0x378   :  { %v1025_v23 = vpop.permute.xlu0 %1024 }
 0x38d   :  { %v484_v61 = vpop.xlane.xlu1 %483 }
 0x38e   :  { %3798 = vrcp.f32 %v484_v61  ;;  %v4172_v61 = vld [vmem:[#allocation7 + $0x30] sm:$0xff] }
 0x391   :  { %v493_v62 = vpop.permute.xlu1 %492 }
 0x392   :  { %3545 = vmatprep.subr.mxu0 %v493_v62 }
 0x393   :  { %3546 = vmatpush3.msra.mxu0 %v493_v62 }
 0x394   :  { %3550 = vmatprep.subr.mxu0 %v4125_v63 }
 0x395   :  { %v746_v18 = vpop.permute.xlu1 %745 }
 0x399   :  { %v744_v22 = vpop.permute.xlu1 %743 }
 0x39b   :  { %v3799_v5 = vpop.eup %3798 }
 0x39c   :  { %v489_v7 = vmul.f32 %v3799_v5, %v3791_v50 }
 0x39d   :  { %v1029_v24 = vpop.permute.xlu1 %1028 }
 0x39e   :  { %3547 = vmatprep.mubr.msk.f32.mxu0 %vm269_vm2, %v489_v7 }
 0x39f   :  { %3548 = vmatmul.mubr.msk.f32.vlgmr.msra.gmra.mxu0 %vm269_vm2, %v491_v9 }
 0x3a0   :  { %3551 = vmatpush3.msra.mxu0 %v4125_v63 }
 0x3a1   :  { %3560 = vmatprep.subr.msk.mxu0 %vm185_vm1, %v748_v11  ;;  %v1027_v25 = vpop.permute.xlu1 %1026 }
 0x42b   :  { %v3535_v13 = vpop.f32.mrf.mxu0 }
 0x42d   :  { %v370_v14 = vpop.f32.mrf.mxu0 }
 0x42e   :  { %3557 = vmatprep.mubr.msk.f32.mxu1 %vm185_vm1, %v370_v14 }
 0x42f   :  { %3558 = vmatmul.mubr.msk.f32.vlgmr.msra.gmra.mxu1 %vm185_vm1, %v3535_v13 }
 0x45f   :  { %v3549_v16 = vpop.f32.mrf.mxu0 }
 0x461   :  { %v570_v20 = vpop.f32.mrf.mxu0 }
 0x462   :  { %3552 = vmatprep.mubr.msk.f32.mxu0 %vm185_vm1, %v570_v20 }
 0x463   :  { %3553 = vmatmul.mubr.msk.f32.vlgmr.msra.gmra.mxu0 %vm185_vm1, %v3549_v16 }
 0x464   :  { %3561 = vmatpush3.xpose.msk.msra.mxu0 %vm185_vm1, %v748_v11  ;;  %3564 = vmatprep.mubr.msk.f32.mxu0 %vm185_vm1, %v742_v15 }
 0x465   :  { %3562 = vmatprep.subr.msk.mxu0 %vm185_vm1, %v746_v18 }
 0x468   :  { %3563 = vmatpush3.xpose.msk.msra.mxu0 %vm185_vm1, %v746_v18 }
 0x469   :  { %3579 = vmatprep.subr.msk.mxu0 %vm185_vm1, %v1031_v21 }
 0x46b   :  { %3565 = vmatmul.mubr.msk.f32.vlgmr.msra.gmra.mxu0 %vm185_vm1, %v744_v22 }
 0x46c   :  { %3580 = vmatpush3.xpose.msk.msra.mxu0 %vm185_vm1, %v1031_v21  ;;  %3583 = vmatprep.mubr.msk.f32.mxu0 %vm185_vm1, %v1025_v23 }
 0x46d   :  { %3581 = vmatprep.subr.msk.mxu0 %vm185_vm1, %v1029_v24 }
 0x470   :  { %3582 = vmatpush3.xpose.msk.msra.mxu0 %vm185_vm1, %v1029_v24 }
 0x473   :  { %3584 = vmatmul.mubr.msk.f32.vlgmr.msra.gmra.mxu0 %vm185_vm1, %v1027_v25 }
 0x4ef   :  { %v3559_v26 = vpop.f32.mrf.mxu1 }
 0x4f1   :  { %v732_v18 = vpop.f32.mrf.mxu1 }
 0x523   :  { %v3554_v27 = vpop.f32.mrf.mxu0 }
 0x524   :  { %v4151_v28 = vadd.f32 %v3559_v26, %v3554_v27  ;;  %v4185_v27 = vld [vmem:[#allocation7 + $0x38] sm:$0xff] }
 0x525   :  { %v4153_v29 = vpop.f32.mrf.mxu0 }
 0x52b   :  { %v3566_v30 = vpop.f32.mrf.mxu0 }
 0x52c   :  { %v829_v31 = vadd.f32 %v3566_v30, %v4083_v17 }
 0x52d   :  { %v823_v32 = vpop.f32.mrf.mxu0 }
 0x52e   :  { %v824_v33 = vadd.f32 %v823_v32, %v4085_v19  ;;  %v835_v34 = vsel %vm269_vm2, %v829_v31, -inf }
 0x52f   :  { %836 = vmax.xlane.f32.xlu1 %v835_v34 }
 0x530   :  { %v832_v35 = vsel %vm269_vm2, %v824_v33, -inf }
 0x531   :  { %833 = vmax.xlane.f32.xlu0 %v832_v35 }
 0x533   :  { %v3585_v36 = vpop.f32.mrf.mxu0 }
 0x534   :  { %v1112_v55 = vadd.f32 %v3585_v36, %v4083_v17 }
 0x535   :  { %v1106_v37 = vpop.f32.mrf.mxu0 }
 0x536   :  { %v1107_v38 = vadd.f32 %v1106_v37, %v4085_v19  ;;  %v1118_v57 = vsel %vm269_vm2, %v1112_v55, -inf  ;;  %v4193_v37 = vld [vmem:[#allocation7 + $0x58] sm:$0xff] }
 0x537   :  { %3598 = vmatprep.subr.mxu0 %v4193_v37 }
 0x538   :  { %v1115_v39 = vsel %vm269_vm2, %v1107_v38, -inf  ;;  %3599 = vmatpush3.msra.mxu0 %v4193_v37 }
 0x540   :  { %856 = vrot.lane.b32.xlu1 %v4052_v8, %s3990_s8 }
 0x564   :  { %1116 = vmax.xlane.f32.xlu1 %v1115_v39 }
 0x5b8   :  { %v837_v40 = vpop.xlane.xlu1 %836 }
 0x5b9   :  { %v839_v41 = vsub.f32 %v829_v31, %v837_v40  ;;  %v733_v31 = vadd.f32 %v732_v18, %v4153_v29  ;;  %v4204_v29 = vld [vmem:[#allocation7 + $0x40] sm:$0xff] }
 0x5ba   :  { %v834_v42 = vpop.xlane.xlu0 %833 }
 0x5bb   :  { %v842_v43 = vmul.f32 1.442695, %v839_v41  ;;  %v838_v44 = vsub.f32 %v824_v33, %v834_v42  ;;  %v4209_v42 = vld [vmem:[#allocation7 + $0xc1] ss:$0 sm:$0xff] }
 0x5bc   :  { %v857_v45 = vpop.permute.xlu1 %856 }
 0x5bd   :  { %3800 = vpow2.f32 %v842_v43  ;;  %v840_v46 = vmul.f32 1.442695, %v838_v44  ;;  %3567 = vmatprep.subr.mxu1 %v857_v45 }
 0x5be   :  { %3568 = vmatpush3.msra.mxu1 %v857_v45 }
 0x5bf   :  { %3802 = vpow2.f32 %v840_v46  ;;  %v4215_v46 = vld [vmem:[#allocation7 + $0xc2] ss:$0 sm:$0xff] }
 0x5ca   :  { %v3801_v47 = vpop.eup %3800 }
 0x5cb   :  { %v847_v48 = vsel %vm269_vm2, %v3801_v47, 0.0 }
 0x5cc   :  { %v3803_v49 = vpop.eup %3802  ;;  %848 = vadd.xlane.f32.xlu0 %v847_v48 }
 0x5cd   :  { %v844_v50 = vsel %vm269_vm2, %v3803_v49, 0.0 }
 0x5d0   :  { %845 = vadd.xlane.f32.xlu0 %v844_v50 }
 0x5e6   :  { %854 = vrot.lane.b32.xlu0 %v4055_v10, %s3990_s8 }
 0x5ed   :  { %v1117_v51 = vpop.xlane.xlu1 %1116 }
 0x5ee   :  { %v1121_v52 = vsub.f32 %v1107_v38, %v1117_v51  ;;  %v4197_v38 = vld [vmem:[#allocation7 + $0x50] sm:$0xff] }
 0x5ef   :  { %3600 = vmatprep.subr.mxu0 %v4197_v38 }
 0x5f0   :  { %v1123_v53 = vmul.f32 1.442695, %v1121_v52  ;;  %3601 = vmatpush3.msra.mxu0 %v4197_v38 }
 0x5f2   :  { %3804 = vpow2.f32 %v1123_v53 }
 0x5ff   :  { %v3805_v54 = vpop.eup %3804 }
 0x600   :  { %v1127_v56 = vsel %vm269_vm2, %v3805_v54, 0.0 }
 0x601   :  { %1128 = vadd.xlane.f32.xlu1 %v1127_v56 }
 0x605   :  { %1119 = vmax.xlane.f32.xlu0 %v1118_v57 }
 0x612   :  { %1139 = vrot.lane.b32.xlu1 %v4052_v8, %s3991_s9 }
 0x655   :  { %v849_v58 = vpop.xlane.xlu0 %848 }
 0x656   :  { %3806 = vrcp.f32 %v849_v58 }
 0x659   :  { %v846_v59 = vpop.xlane.xlu0 %845 }
 0x65a   :  { %3808 = vrcp.f32 %v846_v59 }
 0x65d   :  { %v855_v60 = vpop.permute.xlu0 %854 }
 0x65e   :  { %3569 = vmatprep.subr.mxu1 %v855_v60 }
 0x65f   :  { %3570 = vmatpush3.msra.mxu1 %v855_v60 }
 0x660   :  { %3574 = vmatprep.subr.mxu1 %v4172_v61 }
 0x663   :  { %v3807_v62 = vpop.eup %3806 }
 0x664   :  { %v853_v7 = vmul.f32 %v3807_v62, %v3801_v47 }
 0x667   :  { %v3809_v2 = vpop.eup %3808 }
 0x668   :  { %v851_v5 = vmul.f32 %v3809_v2, %v3803_v49 }
 0x66a   :  { %3571 = vmatprep.mubr.msk.f32.mxu1 %vm269_vm2, %v851_v5 }
 0x66b   :  { %3572 = vmatmul.mubr.msk.f32.vlgmr.msra.gmra.mxu1 %vm269_vm2, %v853_v7 }
 0x66c   :  { %3575 = vmatpush3.msra.mxu1 %v4172_v61 }
 0x68a   :  { %v1129_v8 = vpop.xlane.xlu1 %1128 }
 0x68e   :  { %v1140_v9 = vpop.permute.xlu1 %1139  ;;  %v1120_v11 = vpop.xlane.xlu0 %1119 }
 0x68f   :  { %v1122_v13 = vsub.f32 %v1112_v55, %v1120_v11  ;;  %3586 = vmatprep.subr.mxu1 %v1140_v9  ;;  %v4229_v11 = vld [vmem:[#allocation7 + $0x68] sm:$0xff] }
 0x691   :  { %v1125_v14 = vmul.f32 1.442695, %v1122_v13  ;;  %v4233_v13 = vld [vmem:[#allocation7 + $0x60] sm:$0xff] }
 0x693   :  { %3810 = vpow2.f32 %v1125_v14 }
 0x694   :  { %3812 = vrcp.f32 %v1129_v8  ;;  %v4223_v8 = vld [vmem:[#allocation7 + $0x78] sm:$0xff] }
 0x6a0   :  { %v3811_v15 = vpop.eup %3810 }
 0x6a1   :  { %v1130_v16 = vsel %vm269_vm2, %v3811_v15, 0.0  ;;  %v3813_v20 = vpop.eup %3812 }
 0x6a2   :  { %1131 = vadd.xlane.f32.xlu0 %v1130_v16  ;;  %v1134_v24 = vmul.f32 %v3813_v20, %v3805_v54 }
 0x6b8   :  { %1137 = vrot.lane.b32.xlu0 %v4055_v10, %s3991_s9 }
 0x72b   :  { %v3573_v21 = vpop.f32.mrf.mxu1  ;;  %v1132_v22 = vpop.xlane.xlu0 %1131 }
 0x72c   :  { %3814 = vrcp.f32 %v1132_v22 }
 0x72d   :  { %v932_v23 = vpop.f32.mrf.mxu1 }
 0x72e   :  { %3576 = vmatprep.mubr.msk.f32.mxu1 %vm185_vm1, %v932_v23 }
 0x72f   :  { %3577 = vmatmul.mubr.msk.f32.vlgmr.msra.gmra.mxu1 %vm185_vm1, %v3573_v21  ;;  %v1138_v25 = vpop.permute.xlu0 %1137 }
 0x730   :  { %3587 = vmatpush3.msra.mxu1 %v1140_v9  ;;  %3590 = vmatprep.mubr.msk.f32.mxu1 %vm269_vm2, %v1134_v24  ;;  %v4225_v9 = vld [vmem:[#allocation7 + $0x70] sm:$0xff] }
 0x731   :  { %3588 = vmatprep.subr.mxu1 %v1138_v25 }
 0x732   :  { %3589 = vmatpush3.msra.mxu1 %v1138_v25 }
 0x733   :  { %3593 = vmatprep.subr.mxu1 %v4185_v27 }
 0x739   :  { %v3815_v26 = vpop.eup %3814 }
 0x73a   :  { %v1136_v10 = vmul.f32 %v3815_v26, %v3811_v15 }
 0x73c   :  { %3591 = vmatmul.mubr.msk.f32.vlgmr.msra.gmra.mxu1 %vm269_vm2, %v1136_v10 }
 0x73d   :  { %3594 = vmatpush3.msra.mxu1 %v4185_v27 }
 0x73e   :  { %3609 = vmatprep.subr.mxu1 %v4223_v8 }
 0x7ef   :  { %v3578_v30 = vpop.f32.mrf.mxu1 }
 0x7f0   :  { %v1023_v32 = vadd.f32 %v3578_v30, %v4151_v28  ;;  %v4201_v28 = vld [vmem:[#allocation7 + $0x48] sm:$0xff] }
 0x7f1   :  { %v1013_v33 = vpop.f32.mrf.mxu1  ;;  %3602 = vmatprep.subr.mxu0 %v4201_v28 }
 0x7f2   :  { %v1022_v34 = vadd.f32 %v1013_v33, %v733_v31  ;;  %3603 = vmatpush3.msra.mxu0 %v4201_v28 }
 0x7f3   :  { %3604 = vmatprep.subr.mxu0 %v4204_v29 }
 0x7f4   :  { %3605 = vmatpush3.msra.mxu0 %v4204_v29 }
 0x7fc   :  { %v3592_v35 = vpop.f32.mrf.mxu1 }
 0x7fe   :  { %v1215_v36 = vpop.f32.mrf.mxu1 }
 0x7ff   :  { %3595 = vmatprep.mubr.msk.f32.mxu1 %vm185_vm1, %v1215_v36 }
 0x800   :  { %3596 = vmatmul.mubr.msk.f32.vlgmr.msra.gmra.mxu1 %vm185_vm1, %v3592_v35 }
 0x801   :  { %3610 = vmatpush3.msra.mxu1 %v4223_v8 }
 0x802   :  { %3611 = vmatprep.subr.mxu1 %v4225_v9 }
 0x803   :  { %3612 = vmatpush3.msra.mxu1 %v4225_v9 }
 0x804   :  { %3613 = vmatprep.subr.mxu1 %v4229_v11 }
 0x805   :  { %3614 = vmatpush3.msra.mxu1 %v4229_v11 }
 0x806   :  { %3615 = vmatprep.subr.mxu1 %v4233_v13 }
 0x807   :  { %3616 = vmatpush3.msra.mxu1 %v4233_v13 }
 0x808   :  { %3639 = vmatprep.subr.mxu1 %v4031_v0 }
 0x8c0   :  { %v3597_v39 = vpop.f32.mrf.mxu1 }
 0x8c1   :  { %v1306_v40 = vadd.f32 %v3597_v39, %v1023_v32 }
 0x8c2   :  { %v1296_v41 = vpop.f32.mrf.mxu1 }
 0x8c3   :  { %v1305_v43 = vadd.f32 %v1296_v41, %v1022_v34  ;;  %v1312_v45 = vadd.f32 %v4209_v42, %v1306_v40  ;;  %v4240_v34 = vld [vmem:[#allocation7 + $0xc5] ss:$0 sm:$0xff] }
 0x8c5   :  { %v1311_v44 = vadd.f32 %v4209_v42, %v1305_v43  ;;  %v4244_v43 = vld [vmem:[#allocation7 + $0xc6] ss:$0 sm:$0xff] }
 0x8c7   :  { %3606 = vmatprep.mubr.msk.f32.mxu0 %vm97_vm0, %v1311_v44 }
 0x8c8   :  { %3607 = vmatmul.mubr.msk.f32.vlgmr.msra.gmra.mxu0 %vm97_vm0, %v1312_v45 }
 0x988   :  { %v3608_v47 = vpop.f32.mrf.mxu0 }
 0x989   :  { %v1395_v48 = vadd.f32 %v3608_v47, %v4215_v46 }
 0x98a   :  { %v1389_v49 = vpop.f32.mrf.mxu0 }
 0x98b   :  { %v1390_v50 = vadd.f32 %v4215_v46, %v1389_v49  ;;  %v1399_v51 = vadd.f32 %v1395_v48, %v1312_v45  ;;  %v4263_v48 = vld [vmem:[#allocation7 + $0xb8] sm:$0xff]  ;;  %v4267_v49 = vld [vmem:[#allocation7 + $0xb0] sm:$0xff] }
 0x98c   :  { %3620 = vmatprep.subr.mxu0 %v4263_v48 }
 0x98d   :  { %v1403_v52 = vsel %vm97_vm0, %v1399_v51, 0.0  ;;  %v1398_v53 = vadd.f32 %v1390_v50, %v1311_v44  ;;  %3621 = vmatpush3.msra.mxu0 %v4263_v48  ;;  %v4287_v50 = vld [vmem:[#allocation7 + $0x88] sm:$0xff] }
 0x98e   :  { %1404 = vadd.xlane.f32.xlu0 %v1403_v52  ;;  %3622 = vmatprep.subr.mxu0 %v4267_v49  ;;  %v4295_v52 = vld [vmem:[#allocation7 + $0xc3] ss:$0 sm:$0xff] }
 0x98f   :  { %v1400_v54 = vsel %vm97_vm0, %v1398_v53, 0.0  ;;  %3623 = vmatpush3.msra.mxu0 %v4267_v49 }
 0x990   :  { %1401 = vadd.xlane.f32.xlu1 %v1400_v54 }
 0xa17   :  { %v1405_v55 = vpop.xlane.xlu0 %1404 }
 0xa18   :  { %v1408_v56 = vmul.f32 0.03125, %v1405_v55 }
 0xa19   :  { %v1402_v57 = vpop.xlane.xlu1 %1401 }
 0xa1a   :  { %v1410_v58 = vsub.f32 %v1399_v51, %v1408_v56  ;;  %v1407_v59 = vmul.f32 0.03125, %v1402_v57  ;;  %v4289_v51 = vld [vmem:[#allocation7 + $0x80] sm:$0xff] }
 0xa1c   :  { %v1409_v60 = vsub.f32 %v1398_v53, %v1407_v59  ;;  %v1412_v62 = vmul.f32 %v1410_v58, %v1410_v58  ;;  %v1426_v36 = vmul.f32 %v4240_v34, %v1410_v58 }
 0xa1e   :  { %v1416_v2 = vsel %vm97_vm0, %v1412_v62, 0.0  ;;  %v1411_v5 = vmul.f32 %v1409_v60, %v1409_v60  ;;  %v1425_v39 = vmul.f32 %v4240_v34, %v1409_v60 }
 0xa1f   :  { %1417 = vadd.xlane.f32.xlu0 %v1416_v2 }
 0xa20   :  { %v1413_v7 = vsel %vm97_vm0, %v1411_v5, 0.0 }
 0xa21   :  { %1414 = vadd.xlane.f32.xlu1 %v1413_v7 }
 0xaa8   :  { %v1418_v14 = vpop.xlane.xlu0 %1417 }
 0xaa9   :  { %v1420_v15 = vmul.f32 0.032258064, %v1418_v14 }
 0xaaa   :  { %v1415_v16 = vpop.xlane.xlu1 %1414 }
 0xaab   :  { %3816 = vrsqrt.f32 %v1420_v15  ;;  %v1419_v18 = vmul.f32 0.032258064, %v1415_v16  ;;  %vm1436_vm3 = vcmp.eq.f32.partialorder %v1420_v15, inf  ;;  %v1439_v22 = vand.u32 2147483648, %v1420_v15 }
 0xaac   :  { %vm1438_vm4 = vcmp.eq.f32.partialorder %v1420_v15, 0.0 }
 0xaad   :  { %3818 = vrsqrt.f32 %v1419_v18  ;;  %vm1429_vm5 = vcmp.eq.f32.partialorder %v1419_v18, inf  ;;  %v1432_v30 = vand.u32 2147483648, %v1419_v18  ;;  %vm1431_vm6 = vcmp.eq.f32.partialorder %v1419_v18, 0.0 }
 0xab8   :  { %v3817_v20 = vpop.eup %3816 }
 0xab9   :  { %v1435_v21 = vmul.f32 %v3817_v20, %v1420_v15 }
 0xaba   :  { %v3819_v23 = vpop.eup %3818 }
 0xabb   :  { %v1437_v24 = vsel %vm1436_vm3, %v1420_v15, %v1435_v21  ;;  %v1428_v26 = vmul.f32 %v3819_v23, %v1419_v18 }
 0xabc   :  { %v1440_v25 = vsel %vm1438_vm4, %v1439_v22, %v1437_v24 }
 0xabd   :  { %v1442_v10 = vadd.f32 1e-06, %v1440_v25  ;;  %v1430_v31 = vsel %vm1429_vm5, %v1419_v18, %v1428_v26  ;;  %v4301_v26 = vld [vmem:[#allocation7 + $0xc4] ss:$0 sm:$0xff] }
 0xabe   :  { %v1433_v32 = vsel %vm1431_vm6, %v1432_v30, %v1430_v31 }
 0xabf   :  { %3820 = vrcp.f32 %v1442_v10  ;;  %v1441_v33 = vadd.f32 1e-06, %v1433_v32 }
 0xac1   :  { %3822 = vrcp.f32 %v1441_v33 }
 0xacc   :  { %v3821_v35 = vpop.eup %3820 }
 0xacd   :  { %v1446_v41 = vmul.f32 %v3821_v35, %v1426_v36 }
 0xace   :  { %v3823_v40 = vpop.eup %3822 }
 0xacf   :  { %v1444_v44 = vmul.f32 %v3823_v40, %v1425_v39  ;;  %v4250_v47 = vadd.f32 %v4244_v43, %v1446_v41 }
 0xad1   :  { %v4247_v45 = vadd.f32 %v4244_v43, %v1444_v44 }
 0xad3   :  { %3617 = vmatprep.mubr.msk.f32.mxu1 %vm97_vm0, %v4247_v45 }
 0xad4   :  { %3618 = vmatmul.mubr.msk.f32.vlgmr.msra.gmra.mxu1 %vm97_vm0, %v4250_v47 }
 0xad5   :  { %3640 = vmatpush3.msra.mxu1 %v4031_v0  ;;  %v4271_v0 = vld [vmem:[#allocation7 + $0xa8] sm:$0xff] }
 0xad6   :  { %3641 = vmatprep.subr.mxu1 %v4033_v1  ;;  %3624 = vmatprep.subr.mxu0 %v4271_v0 }
 0xad7   :  { %3642 = vmatpush3.msra.mxu1 %v4033_v1  ;;  %3625 = vmatpush3.msra.mxu0 %v4271_v0  ;;  %v4275_v1 = vld [vmem:[#allocation7 + $0xa0] sm:$0xff] }
 0xad8   :  { %3643 = vmatprep.subr.mxu1 %v4037_v3  ;;  %3626 = vmatprep.subr.mxu0 %v4275_v1 }
 0xad9   :  { %3644 = vmatpush3.msra.mxu1 %v4037_v3  ;;  %3627 = vmatpush3.msra.mxu0 %v4275_v1  ;;  %v4279_v3 = vld [vmem:[#allocation7 + $0x98] sm:$0xff] }
 0xada   :  { %3645 = vmatprep.subr.mxu1 %v4042_v4  ;;  %3628 = vmatprep.subr.mxu0 %v4279_v3 }
 0xadb   :  { %3646 = vmatpush3.msra.mxu1 %v4042_v4  ;;  %3629 = vmatpush3.msra.mxu0 %v4279_v3  ;;  %v4283_v4 = vld [vmem:[#allocation7 + $0x90] sm:$0xff] }
 0xadc   :  { %3630 = vmatprep.subr.mxu0 %v4283_v4 }
 0xadd   :  { %3631 = vmatpush3.msra.mxu0 %v4283_v4 }
 0xade   :  { %3632 = vmatprep.subr.mxu0 %v4287_v50 }
 0xadf   :  { %3633 = vmatpush3.msra.mxu0 %v4287_v50 }
 0xae0   :  { %3634 = vmatprep.subr.mxu0 %v4289_v51 }
 0xae1   :  { %3635 = vmatpush3.msra.mxu0 %v4289_v51 }
 0xb94   :  { %v3619_v53 = vpop.f32.mrf.mxu1 }
 0xb95   :  { %v1535_v54 = vadd.f32 %v3619_v53, %v4295_v52 }
 0xb96   :  { %v1529_v55 = vpop.f32.mrf.mxu1 }
 0xb97   :  { %v1541_v56 = vmul.f32 %v1535_v54, %v1535_v54  ;;  %v1530_v57 = vadd.f32 %v4295_v52, %v1529_v55  ;;  %v1539_v23 = vmul.f32 0.5, %v1535_v54 }
 0xb99   :  { %v1543_v58 = vmul.f32 %v1541_v56, %v1535_v54  ;;  %v1540_v59 = vmul.f32 %v1530_v57, %v1530_v57  ;;  %v1538_v21 = vmul.f32 0.5, %v1530_v57 }
 0xb9b   :  { %v1545_v60 = vmul.f32 0.044715, %v1543_v58  ;;  %v1542_v62 = vmul.f32 %v1540_v59, %v1530_v57 }
 0xb9d   :  { %v1547_v2 = vadd.f32 %v1545_v60, %v1535_v54  ;;  %v1544_v5 = vmul.f32 0.044715, %v1542_v62 }
 0xb9f   :  { %v1549_v7 = vmul.f32 0.7978846, %v1547_v2  ;;  %v1546_v14 = vadd.f32 %v1544_v5, %v1530_v57 }
 0xba1   :  { %3824 = vtanh.f32 %v1549_v7  ;;  %v1548_v15 = vmul.f32 0.7978846, %v1546_v14 }
 0xba3   :  { %3826 = vtanh.f32 %v1548_v15 }
 0xbae   :  { %v3825_v16 = vpop.eup %3824 }
 0xbaf   :  { %v1553_v20 = vadd.f32 1.0, %v3825_v16 }
 0xbb0   :  { %v3827_v18 = vpop.eup %3826 }
 0xbb1   :  { %v1552_v22 = vadd.f32 1.0, %v3827_v18  ;;  %v1555_v25 = vmul.f32 %v1553_v20, %v1539_v23 }
 0xbb3   :  { %v1554_v24 = vmul.f32 %v1552_v22, %v1538_v21 }
 0xbb5   :  { %3636 = vmatprep.mubr.msk.f32.mxu0 %vm1560_vm7, %v1554_v24 }
 0xbb6   :  { %3637 = vmatmul.mubr.msk.f32.vlgmr.msra.gmra.mxu0 %vm1560_vm7, %v1555_v25  ;;  %v4311_v25 = vld [vmem:[#allocation7 + $0xc7] ss:$0 sm:$0xff] }
 0xc76   :  { %v3638_v10 = vpop.f32.mrf.mxu0 }
 0xc77   :  { %v1639_v30 = vadd.f32 %v3638_v10, %v4301_v26 }
 0xc78   :  { %v1633_v31 = vpop.f32.mrf.mxu0 }
 0xc79   :  { %v1634_v32 = vadd.f32 %v4301_v26, %v1633_v31  ;;  %v1643_v33 = vadd.f32 %v1639_v30, %v4250_v47 }
 0xc7b   :  { %v1647_v35 = vsel %vm97_vm0, %v1643_v33, 0.0  ;;  %v1642_v36 = vadd.f32 %v1634_v32, %v4247_v45 }
 0xc7c   :  { %1648 = vadd.xlane.f32.xlu0 %v1647_v35  ;;  %v4315_v35 = vld [vmem:[#allocation7 + $0xc8] ss:$0 sm:$0xff] }
 0xc7d   :  { %v1644_v39 = vsel %vm97_vm0, %v1642_v36, 0.0 }
 0xc7e   :  { %1645 = vadd.xlane.f32.xlu1 %v1644_v39 }
 0xd05   :  { %v1649_v40 = vpop.xlane.xlu0 %1648 }
 0xd06   :  { %v1651_v41 = vmul.f32 0.03125, %v1649_v40 }
 0xd07   :  { %v1646_v44 = vpop.xlane.xlu1 %1645 }
 0xd08   :  { %v1653_v53 = vsub.f32 %v1643_v33, %v1651_v41  ;;  %v1650_v54 = vmul.f32 0.03125, %v1646_v44 }
 0xd0a   :  { %v1652_v55 = vsub.f32 %v1642_v36, %v1650_v54  ;;  %v1655_v56 = vmul.f32 %v1653_v53, %v1653_v53  ;;  %v1669_v30 = vmul.f32 %v4311_v25, %v1653_v53 }
 0xd0c   :  { %v1659_v57 = vsel %vm97_vm0, %v1655_v56, 0.0  ;;  %v1654_v58 = vmul.f32 %v1652_v55, %v1652_v55  ;;  %v1668_v31 = vmul.f32 %v4311_v25, %v1652_v55 }
 0xd0d   :  { %1660 = vadd.xlane.f32.xlu0 %v1659_v57 }
 0xd0e   :  { %v1656_v47 = vsel %vm97_vm0, %v1654_v58, 0.0 }
 0xd0f   :  { %1657 = vadd.xlane.f32.xlu1 %v1656_v47 }
 0xd96   :  { %v1661_v59 = vpop.xlane.xlu0 %1660 }
 0xd97   :  { %v1663_v45 = vmul.f32 0.032258064, %v1661_v59 }
 0xd98   :  { %v1658_v60 = vpop.xlane.xlu1 %1657 }
 0xd99   :  { %3828 = vrsqrt.f32 %v1663_v45  ;;  %v1662_v62 = vmul.f32 0.032258064, %v1658_v60  ;;  %vm1679_vm8 = vcmp.eq.f32.partialorder %v1663_v45, inf  ;;  %v1682_v7 = vand.u32 2147483648, %v1663_v45 }
 0xd9a   :  { %vm1681_vm9 = vcmp.eq.f32.partialorder %v1663_v45, 0.0 }
 0xd9b   :  { %3830 = vrsqrt.f32 %v1662_v62  ;;  %vm1672_vm10 = vcmp.eq.f32.partialorder %v1662_v62, inf  ;;  %v1675_v21 = vand.u32 2147483648, %v1662_v62  ;;  %vm1674_vm11 = vcmp.eq.f32.partialorder %v1662_v62, 0.0 }
 0xda6   :  { %v3829_v2 = vpop.eup %3828 }
 0xda7   :  { %v1678_v5 = vmul.f32 %v3829_v2, %v1663_v45 }
 0xda8   :  { %v3831_v14 = vpop.eup %3830 }
 0xda9   :  { %v1680_v15 = vsel %vm1679_vm8, %v1663_v45, %v1678_v5  ;;  %v1671_v18 = vmul.f32 %v3831_v14, %v1662_v62 }
 0xdaa   :  { %v1683_v16 = vsel %vm1681_vm9, %v1682_v7, %v1680_v15 }
 0xdab   :  { %v1685_v20 = vadd.f32 1e-06, %v1683_v16  ;;  %v1673_v22 = vsel %vm1672_vm10, %v1662_v62, %v1671_v18 }
 0xdac   :  { %v1676_v23 = vsel %vm1674_vm11, %v1675_v21, %v1673_v22 }
 0xdad   :  { %3832 = vrcp.f32 %v1685_v20  ;;  %v1684_v24 = vadd.f32 1e-06, %v1676_v23 }
 0xdaf   :  { %3834 = vrcp.f32 %v1684_v24 }
 0xdba   :  { %v3833_v10 = vpop.eup %3832 }
 0xdbb   :  { %v1689_v33 = vmul.f32 %v3833_v10, %v1669_v30 }
 0xdbc   :  { %v3835_v32 = vpop.eup %3834 }
 0xdbd   :  { %v1687_v36 = vmul.f32 %v3835_v32, %v1668_v31  ;;  %v1695_v40 = vadd.f32 %v4315_v35, %v1689_v33 }
 0xdbf   :  { %v1694_v39 = vadd.f32 %v4315_v35, %v1687_v36 }
 0xdc1   :  { %3647 = vmatprep.mubr.msk.f32.mxu1 %vm97_vm0, %v1694_v39 }
 0xdc2   :  { %3648 = vmatmul.mubr.msk.f32.vlgmr.msra.gmra.mxu1 %vm97_vm0, %v1695_v40 }
 0xe82   :  { %v3649_v41 = vpop.f32.mrf.mxu1 }
 0xe83   :  { %v4322_v44 = vadd.f32 %v3649_v41, %v4049_v6 }
 0xe84   :  { %v1768_v53 = vpop.f32.mrf.mxu1 }
 0xe85   :  { %v4325_v54 = vadd.f32 %v4049_v6, %v1768_v53  ;;  %1781 = vrot.lane.b32.xlu1 %v4322_v44, %s3982_s2 }
 0xe87   :  { %1779 = vrot.lane.b32.xlu0 %v4325_v54, %s3982_s2  ;;  %3654 = vmatprep.mubr.msk.f32.mxu1 %vm185_vm1, %v4325_v54 }
 0xe89   :  { %1981 = vrot.lane.b32.xlu1 %v4322_v44, %s3981_s0 }
 0xe8b   :  { %1975 = vrot.lane.b32.xlu0 %v4325_v54, %s3983_s28 }
 0xe8d   :  { %1979 = vrot.lane.b32.xlu1 %v4325_v54, %s3981_s0 }
 0xe91   :  { %1977 = vrot.lane.b32.xlu1 %v4322_v44, %s3983_s28 }
 0xef7   :  { %v1782_v6 = vpop.permute.xlu1 %1781 }
 0xef8   :  { %3650 = vmatprep.subr.msk.mxu1 %vm185_vm1, %v1782_v6 }
 0xef9   :  { %3651 = vmatpush3.xpose.msk.msra.mxu1 %vm185_vm1, %v1782_v6  ;;  %v1780_v55 = vpop.permute.xlu0 %1779 }
 0xefa   :  { %3652 = vmatprep.subr.msk.mxu1 %vm185_vm1, %v1780_v55 }
 0xefb   :  { %v1982_v56 = vpop.permute.xlu1 %1981 }
 0xefd   :  { %3653 = vmatpush3.xpose.msk.msra.mxu1 %vm185_vm1, %v1780_v55  ;;  %v1976_v57 = vpop.permute.xlu0 %1975 }
 0xefe   :  { %3664 = vmatprep.subr.msk.mxu1 %vm185_vm1, %v1982_v56 }
 0xeff   :  { %v1980_v58 = vpop.permute.xlu1 %1979 }
 0xf00   :  { %3655 = vmatmul.mubr.msk.f32.vlgmr.msra.gmra.mxu1 %vm185_vm1, %v4322_v44 }
 0xf01   :  { %3665 = vmatpush3.xpose.msk.msra.mxu1 %vm185_vm1, %v1982_v56  ;;  %3668 = vmatprep.mubr.msk.f32.mxu1 %vm185_vm1, %v1976_v57 }
 0xf02   :  { %3666 = vmatprep.subr.msk.mxu1 %vm185_vm1, %v1980_v58 }
 0xf03   :  { %v1978_v47 = vpop.permute.xlu1 %1977 }
 0xf05   :  { %3667 = vmatpush3.xpose.msk.msra.mxu1 %vm185_vm1, %v1980_v58 }
 0xf06   :  { %3683 = vmatprep.subr.mxu1 %v4132_v12 }
 0xf08   :  { %3669 = vmatmul.mubr.msk.f32.vlgmr.msra.gmra.mxu1 %vm185_vm1, %v1978_v47 }
 0xf09   :  { %3684 = vmatpush3.msra.mxu1 %v4132_v12 }
 0xfc0   :  { %v3656_v59 = vpop.f32.mrf.mxu1 }
 0xfc1   :  { %v1863_v45 = vadd.f32 %v3656_v59, %v4083_v17 }
 0xfc2   :  { %v1857_v60 = vpop.f32.mrf.mxu1 }
 0xfc3   :  { %v1858_v62 = vadd.f32 %v1857_v60, %v4085_v19  ;;  %v1869_v2 = vsel %vm269_vm2, %v1863_v45, -inf }
 0xfc4   :  { %1870 = vmax.xlane.f32.xlu1 %v1869_v2 }
 0xfc5   :  { %v1866_v5 = vsel %vm269_vm2, %v1858_v62, -inf }
 0xfc6   :  { %1867 = vmax.xlane.f32.xlu0 %v1866_v5 }
 0xfc8   :  { %v3670_v7 = vpop.f32.mrf.mxu1 }
 0xfc9   :  { %v2063_v16 = vadd.f32 %v3670_v7, %v4083_v17 }
 0xfca   :  { %v2057_v14 = vpop.f32.mrf.mxu1 }
 0xfcb   :  { %v2058_v15 = vadd.f32 %v2057_v14, %v4085_v19  ;;  %v2069_v18 = vsel %vm269_vm2, %v2063_v16, -inf }
 0xfcd   :  { %v2066_v12 = vsel %vm269_vm2, %v2058_v15, -inf }
 0xfce   :  { %2067 = vmax.xlane.f32.xlu0 %v2066_v12 }
 0xfd2   :  { %2070 = vmax.xlane.f32.xlu0 %v2069_v18 }
 0xfd5   :  { %1890 = vrot.lane.b32.xlu1 %v4322_v44, %s3984_s29 }
0x104d   :  { %v1871_v20 = vpop.xlane.xlu1 %1870 }
0x104e   :  { %v1873_v21 = vsub.f32 %v1863_v45, %v1871_v20 }
0x104f   :  { %v1868_v22 = vpop.xlane.xlu0 %1867 }
0x1050   :  { %v1876_v23 = vmul.f32 1.442695, %v1873_v21  ;;  %v1872_v24 = vsub.f32 %v1858_v62, %v1868_v22 }
0x1051   :  { %v1891_v10 = vpop.permute.xlu1 %1890 }
0x1052   :  { %3836 = vpow2.f32 %v1876_v23  ;;  %v1874_v30 = vmul.f32 1.442695, %v1872_v24  ;;  %3657 = vmatprep.subr.mxu0 %v1891_v10 }
0x1053   :  { %3658 = vmatpush3.msra.mxu0 %v1891_v10 }
0x1054   :  { %3838 = vpow2.f32 %v1874_v30 }
0x1057   :  { %v2068_v17 = vpop.xlane.xlu0 %2067 }
0x1058   :  { %v2072_v6 = vsub.f32 %v2058_v15, %v2068_v17 }
0x105a   :  { %v2074_v55 = vmul.f32 1.442695, %v2072_v6 }
0x105b   :  { %v2071_v19 = vpop.xlane.xlu0 %2070 }
0x105c   :  { %v2073_v31 = vsub.f32 %v2063_v16, %v2071_v19 }
0x105e   :  { %v2076_v32 = vmul.f32 1.442695, %v2073_v31 }
0x105f   :  { %v3837_v33 = vpop.eup %3836 }
0x1060   :  { %3840 = vpow2.f32 %v2076_v32  ;;  %v1881_v36 = vsel %vm269_vm2, %v3837_v33, 0.0 }
0x1061   :  { %v3839_v39 = vpop.eup %3838  ;;  %1882 = vadd.xlane.f32.xlu0 %v1881_v36  ;;  %3842 = vpow2.f32 %v2074_v55  ;;  %v3889_v55 = vld [vmem:[#allocation5] sm:$0xff] }
0x1062   :  { %v1878_v40 = vsel %vm269_vm2, %v3839_v39, 0.0 }
0x1063   :  { %1879 = vadd.xlane.f32.xlu1 %v1878_v40 }
0x106d   :  { %v3841_v41 = vpop.eup %3840 }
0x106e   :  { %v2081_v53 = vsel %vm269_vm2, %v3841_v41, 0.0  ;;  %v3843_v56 = vpop.eup %3842 }
0x106f   :  { %2082 = vadd.xlane.f32.xlu0 %v2081_v53  ;;  %v2078_v57 = vsel %vm269_vm2, %v3843_v56, 0.0  ;;  %v3888_v53 = vld [vmem:[#allocation5 + $0x8] sm:$0xff] }
0x1074   :  { %2090 = vrot.lane.b32.xlu1 %v4322_v44, %s3985_s30 }
0x1085   :  { %1888 = vrot.lane.b32.xlu0 %v4325_v54, %s3984_s29 }
0x1089   :  { %2343 = vrot.lane.b32.xlu0 %v4322_v44, %s3986_s4 }
0x108d   :  { %2337 = vrot.lane.b32.xlu0 %v4325_v54, %s3987_s5 }
0x1091   :  { %2626 = vrot.lane.b32.xlu0 %v4322_v44, %s3988_s6 }
0x1095   :  { %2620 = vrot.lane.b32.xlu0 %v4325_v54, %s3989_s7 }
0x1098   :  { %2079 = vadd.xlane.f32.xlu1 %v2078_v57 }
0x10a9   :  { %2088 = vrot.lane.b32.xlu1 %v4325_v54, %s3985_s30 }
0x10ad   :  { %2341 = vrot.lane.b32.xlu1 %v4325_v54, %s3986_s4 }
0x10b1   :  { %2339 = vrot.lane.b32.xlu1 %v4322_v44, %s3987_s5 }
0x10b5   :  { %2624 = vrot.lane.b32.xlu1 %v4325_v54, %s3988_s6 }
0x10b9   :  { %2622 = vrot.lane.b32.xlu1 %v4322_v44, %s3989_s7 }
0x10ea   :  { %v1883_v58 = vpop.xlane.xlu0 %1882 }
0x10eb   :  { %3844 = vrcp.f32 %v1883_v58 }
0x10ec   :  { %v1880_v47 = vpop.xlane.xlu1 %1879 }
0x10ed   :  { %3846 = vrcp.f32 %v1880_v47 }
0x10f0   :  { %v2091_v7 = vpop.permute.xlu1 %2090 }
0x10f8   :  { %v2083_v59 = vpop.xlane.xlu0 %2082  ;;  %v3845_v45 = vpop.eup %3844 }
0x10f9   :  { %v1887_v5 = vmul.f32 %v3845_v45, %v3837_v33  ;;  %3848 = vrcp.f32 %v2083_v59 }
0x10fa   :  { %v3847_v60 = vpop.eup %3846 }
0x10fb   :  { %v1885_v62 = vmul.f32 %v3847_v60, %v3839_v39 }
0x10fc   :  { %v1889_v2 = vpop.permute.xlu0 %1888 }
0x10fd   :  { %3659 = vmatprep.subr.mxu0 %v1889_v2  ;;  %3661 = vmatprep.mubr.msk.f32.mxu0 %vm269_vm2, %v1885_v62 }
0x10fe   :  { %3660 = vmatpush3.msra.mxu0 %v1889_v2 }
0x10ff   :  { %3662 = vmatmul.mubr.msk.f32.vlgmr.msra.gmra.mxu0 %vm269_vm2, %v1887_v5  ;;  %3671 = vmatprep.subr.mxu0 %v2091_v7 }
0x1100   :  { %3672 = vmatpush3.msra.mxu0 %v2091_v7  ;;  %v2344_v21 = vpop.permute.xlu0 %2343 }
0x1104   :  { %v2338_v24 = vpop.permute.xlu0 %2337 }
0x1106   :  { %v3849_v16 = vpop.eup %3848 }
0x1107   :  { %v2087_v20 = vmul.f32 %v3849_v16, %v3841_v41 }
0x1121   :  { %v2080_v14 = vpop.xlane.xlu1 %2079 }
0x1122   :  { %3850 = vrcp.f32 %v2080_v14 }
0x1125   :  { %v2089_v15 = vpop.permute.xlu1 %2088 }
0x1126   :  { %3673 = vmatprep.subr.mxu0 %v2089_v15 }
0x1127   :  { %3674 = vmatpush3.msra.mxu0 %v2089_v15 }
0x1128   :  { %3678 = vmatprep.subr.mxu0 %v4125_v63 }
0x1129   :  { %v2342_v30 = vpop.permute.xlu1 %2341 }
0x112d   :  { %v2340_v19 = vpop.permute.xlu1 %2339 }
0x112f   :  { %v3851_v12 = vpop.eup %3850 }
0x1130   :  { %v2085_v18 = vmul.f32 %v3851_v12, %v3843_v56 }
0x1131   :  { %v2625_v32 = vpop.permute.xlu1 %2624 }
0x1132   :  { %3675 = vmatprep.mubr.msk.f32.mxu0 %vm269_vm2, %v2085_v18 }
0x1133   :  { %3676 = vmatmul.mubr.msk.f32.vlgmr.msra.gmra.mxu0 %vm269_vm2, %v2087_v20 }
0x1134   :  { %3679 = vmatpush3.msra.mxu0 %v4125_v63  ;;  %v2627_v63 = vpop.permute.xlu0 %2626 }
0x1135   :  { %3688 = vmatprep.subr.msk.mxu0 %vm185_vm1, %v2344_v21  ;;  %v2623_v33 = vpop.permute.xlu1 %2622 }
0x1138   :  { %v2621_v31 = vpop.permute.xlu0 %2620 }
0x11bf   :  { %v3663_v22 = vpop.f32.mrf.mxu0 }
0x11c1   :  { %v1966_v23 = vpop.f32.mrf.mxu0 }
0x11c2   :  { %3685 = vmatprep.mubr.msk.f32.mxu1 %vm185_vm1, %v1966_v23 }
0x11c3   :  { %3686 = vmatmul.mubr.msk.f32.vlgmr.msra.gmra.mxu1 %vm185_vm1, %v3663_v22 }
0x11f3   :  { %v3677_v10 = vpop.f32.mrf.mxu0 }
0x11f5   :  { %v2166_v17 = vpop.f32.mrf.mxu0 }
0x11f6   :  { %3680 = vmatprep.mubr.msk.f32.mxu0 %vm185_vm1, %v2166_v17 }
0x11f7   :  { %3681 = vmatmul.mubr.msk.f32.vlgmr.msra.gmra.mxu0 %vm185_vm1, %v3677_v10 }
0x11f8   :  { %3689 = vmatpush3.xpose.msk.msra.mxu0 %vm185_vm1, %v2344_v21  ;;  %3692 = vmatprep.mubr.msk.f32.mxu0 %vm185_vm1, %v2338_v24 }
0x11f9   :  { %3690 = vmatprep.subr.msk.mxu0 %vm185_vm1, %v2342_v30 }
0x11fc   :  { %3691 = vmatpush3.xpose.msk.msra.mxu0 %vm185_vm1, %v2342_v30 }
0x11fd   :  { %3707 = vmatprep.subr.msk.mxu0 %vm185_vm1, %v2627_v63 }
0x11ff   :  { %3693 = vmatmul.mubr.msk.f32.vlgmr.msra.gmra.mxu0 %vm185_vm1, %v2340_v19 }
0x1200   :  { %3708 = vmatpush3.xpose.msk.msra.mxu0 %vm185_vm1, %v2627_v63  ;;  %3711 = vmatprep.mubr.msk.f32.mxu0 %vm185_vm1, %v2621_v31 }
0x1201   :  { %3709 = vmatprep.subr.msk.mxu0 %vm185_vm1, %v2625_v32 }
0x1204   :  { %3710 = vmatpush3.xpose.msk.msra.mxu0 %vm185_vm1, %v2625_v32 }
0x1205   :  { %3726 = vmatprep.subr.mxu0 %v4193_v37 }
0x1207   :  { %3712 = vmatmul.mubr.msk.f32.vlgmr.msra.gmra.mxu0 %vm185_vm1, %v2623_v33 }
0x1208   :  { %3727 = vmatpush3.msra.mxu0 %v4193_v37 }
0x1209   :  { %3728 = vmatprep.subr.mxu0 %v4197_v38 }
0x120a   :  { %3729 = vmatpush3.msra.mxu0 %v4197_v38 }
0x120b   :  { %3730 = vmatprep.subr.mxu0 %v4201_v28 }
0x120c   :  { %3731 = vmatpush3.msra.mxu0 %v4201_v28 }
0x120d   :  { %3732 = vmatprep.subr.mxu0 %v4204_v29 }
0x120e   :  { %3733 = vmatpush3.msra.mxu0 %v4204_v29 }
0x120f   :  { %3748 = vmatprep.subr.mxu0 %v4263_v48 }
0x1283   :  { %v3687_v36 = vpop.f32.mrf.mxu1 }
0x12b7   :  { %v3682_v39 = vpop.f32.mrf.mxu0 }
0x12b8   :  { %v4422_v40 = vadd.f32 %v3687_v36, %v3682_v39 }
0x12b9   :  { %v4424_v41 = vpop.f32.mrf.mxu0 }
0x12bf   :  { %v3694_v37 = vpop.f32.mrf.mxu0 }
0x12c0   :  { %v2425_v6 = vadd.f32 %v3888_v53, %v3694_v37 }
0x12c1   :  { %v2419_v38 = vpop.f32.mrf.mxu0 }
0x12c2   :  { %v2420_v56 = vadd.f32 %v3889_v55, %v2419_v38  ;;  %v2431_v28 = vsel %vm269_vm2, %v2425_v6, -inf }
0x12c3   :  { %2432 = vmax.xlane.f32.xlu1 %v2431_v28 }
0x12c4   :  { %v2428_v57 = vsel %vm269_vm2, %v2420_v56, -inf }
0x12c5   :  { %2429 = vmax.xlane.f32.xlu0 %v2428_v57 }
0x12c7   :  { %v3713_v29 = vpop.f32.mrf.mxu0 }
0x12c8   :  { %v2708_v24 = vadd.f32 %v3888_v53, %v3713_v29 }
0x12c9   :  { %v2702_v58 = vpop.f32.mrf.mxu0 }
0x12ca   :  { %v2703_v47 = vadd.f32 %v3889_v55, %v2702_v58  ;;  %v2714_v30 = vsel %vm269_vm2, %v2708_v24, -inf }
0x12cc   :  { %v2711_v59 = vsel %vm269_vm2, %v2703_v47, -inf }
0x12d4   :  { %2452 = vrot.lane.b32.xlu1 %v4322_v44, %s3990_s8 }
0x12f8   :  { %2712 = vmax.xlane.f32.xlu1 %v2711_v59 }
0x134c   :  { %v2433_v45 = vpop.xlane.xlu1 %2432 }
0x134d   :  { %v2435_v60 = vsub.f32 %v2425_v6, %v2433_v45 }
0x134e   :  { %v2430_v62 = vpop.xlane.xlu0 %2429 }
0x134f   :  { %v2438_v2 = vmul.f32 1.442695, %v2435_v60  ;;  %v2434_v5 = vsub.f32 %v2420_v56, %v2430_v62  ;;  %v2328_v56 = vpop.f32.mrf.mxu1 }
0x1350   :  { %v2453_v7 = vpop.permute.xlu1 %2452  ;;  %v2329_v60 = vadd.f32 %v2328_v56, %v4424_v41 }
0x1351   :  { %3852 = vpow2.f32 %v2438_v2  ;;  %v2436_v14 = vmul.f32 1.442695, %v2434_v5  ;;  %3695 = vmatprep.subr.mxu1 %v2453_v7 }
0x1352   :  { %3696 = vmatpush3.msra.mxu1 %v2453_v7 }
0x1353   :  { %3854 = vpow2.f32 %v2436_v14 }
0x135e   :  { %v3853_v15 = vpop.eup %3852 }
0x135f   :  { %v2443_v16 = vsel %vm269_vm2, %v3853_v15, 0.0 }
0x1360   :  { %v3855_v12 = vpop.eup %3854  ;;  %2444 = vadd.xlane.f32.xlu0 %v2443_v16 }
0x1361   :  { %v2440_v18 = vsel %vm269_vm2, %v3855_v12, 0.0 }
0x1364   :  { %2441 = vadd.xlane.f32.xlu0 %v2440_v18 }
0x137a   :  { %2450 = vrot.lane.b32.xlu0 %v4325_v54, %s3990_s8 }
0x1381   :  { %v2713_v20 = vpop.xlane.xlu1 %2712 }
0x1382   :  { %v2717_v21 = vsub.f32 %v2703_v47, %v2713_v20 }
0x1384   :  { %v2719_v22 = vmul.f32 1.442695, %v2717_v21 }
0x1386   :  { %3856 = vpow2.f32 %v2719_v22 }
0x1393   :  { %v3857_v23 = vpop.eup %3856 }
0x1394   :  { %v2723_v10 = vsel %vm269_vm2, %v3857_v23, 0.0 }
0x1395   :  { %2724 = vadd.xlane.f32.xlu1 %v2723_v10 }
0x1399   :  { %2715 = vmax.xlane.f32.xlu0 %v2714_v30 }
0x13a6   :  { %2735 = vrot.lane.b32.xlu1 %v4322_v44, %s3991_s9 }
0x13e9   :  { %v2445_v17 = vpop.xlane.xlu0 %2444 }
0x13ea   :  { %3858 = vrcp.f32 %v2445_v17 }
0x13ed   :  { %v2442_v63 = vpop.xlane.xlu0 %2441 }
0x13ee   :  { %3860 = vrcp.f32 %v2442_v63 }
0x13f1   :  { %v2451_v19 = vpop.permute.xlu0 %2450 }
0x13f2   :  { %3697 = vmatprep.subr.mxu1 %v2451_v19 }
0x13f3   :  { %3698 = vmatpush3.msra.mxu1 %v2451_v19 }
0x13f4   :  { %3702 = vmatprep.subr.mxu1 %v4172_v61 }
0x13f7   :  { %v3859_v31 = vpop.eup %3858 }
0x13f8   :  { %v2449_v36 = vmul.f32 %v3859_v31, %v3853_v15 }
0x13fb   :  { %v3861_v32 = vpop.eup %3860 }
0x13fc   :  { %v2447_v33 = vmul.f32 %v3861_v32, %v3855_v12 }
0x13fe   :  { %3699 = vmatprep.mubr.msk.f32.mxu1 %vm269_vm2, %v2447_v33 }
0x13ff   :  { %3700 = vmatmul.mubr.msk.f32.vlgmr.msra.gmra.mxu1 %vm269_vm2, %v2449_v36 }
0x1400   :  { %3703 = vmatpush3.msra.mxu1 %v4172_v61 }
0x141e   :  { %v2725_v44 = vpop.xlane.xlu1 %2724 }
0x1422   :  { %v2736_v39 = vpop.permute.xlu1 %2735  ;;  %v2716_v37 = vpop.xlane.xlu0 %2715 }
0x1423   :  { %v2718_v53 = vsub.f32 %v2708_v24, %v2716_v37  ;;  %3714 = vmatprep.subr.mxu1 %v2736_v39 }
0x1425   :  { %v2721_v6 = vmul.f32 1.442695, %v2718_v53 }
0x1427   :  { %3862 = vpow2.f32 %v2721_v6 }
0x1428   :  { %3864 = vrcp.f32 %v2725_v44 }
0x1434   :  { %v3863_v38 = vpop.eup %3862 }
0x1435   :  { %v2726_v55 = vsel %vm269_vm2, %v3863_v38, 0.0  ;;  %v3865_v28 = vpop.eup %3864 }
0x1436   :  { %2727 = vadd.xlane.f32.xlu0 %v2726_v55  ;;  %v2730_v58 = vmul.f32 %v3865_v28, %v3857_v23 }
0x144c   :  { %2733 = vrot.lane.b32.xlu0 %v4325_v54, %s3991_s9 }
0x14bf   :  { %v3701_v57 = vpop.f32.mrf.mxu1  ;;  %v2728_v29 = vpop.xlane.xlu0 %2727 }
0x14c0   :  { %3866 = vrcp.f32 %v2728_v29 }
0x14c1   :  { %v2528_v61 = vpop.f32.mrf.mxu1 }
0x14c2   :  { %3704 = vmatprep.mubr.msk.f32.mxu1 %vm185_vm1, %v2528_v61 }
0x14c3   :  { %3705 = vmatmul.mubr.msk.f32.vlgmr.msra.gmra.mxu1 %vm185_vm1, %v3701_v57  ;;  %v2734_v47 = vpop.permute.xlu0 %2733 }
0x14c4   :  { %3715 = vmatpush3.msra.mxu1 %v2736_v39  ;;  %3718 = vmatprep.mubr.msk.f32.mxu1 %vm269_vm2, %v2730_v58 }
0x14c5   :  { %3716 = vmatprep.subr.mxu1 %v2734_v47 }
0x14c6   :  { %3717 = vmatpush3.msra.mxu1 %v2734_v47 }
0x14c7   :  { %3721 = vmatprep.subr.mxu1 %v4185_v27 }
0x14cd   :  { %v3867_v54 = vpop.eup %3866 }
0x14ce   :  { %v2732_v59 = vmul.f32 %v3867_v54, %v3863_v38 }
0x14d0   :  { %3719 = vmatmul.mubr.msk.f32.vlgmr.msra.gmra.mxu1 %vm269_vm2, %v2732_v59 }
0x14d1   :  { %3722 = vmatpush3.msra.mxu1 %v4185_v27 }
0x14d2   :  { %3737 = vmatprep.subr.mxu1 %v4223_v8 }
0x1583   :  { %v3706_v45 = vpop.f32.mrf.mxu1 }
0x1584   :  { %v2619_v62 = vadd.f32 %v3706_v45, %v4422_v40 }
0x1585   :  { %v2609_v2 = vpop.f32.mrf.mxu1 }
0x1586   :  { %v2618_v5 = vadd.f32 %v2609_v2, %v2329_v60 }
0x1590   :  { %v3720_v7 = vpop.f32.mrf.mxu1 }
0x1592   :  { %v2811_v14 = vpop.f32.mrf.mxu1 }
0x1593   :  { %3723 = vmatprep.mubr.msk.f32.mxu1 %vm185_vm1, %v2811_v14 }
0x1594   :  { %3724 = vmatmul.mubr.msk.f32.vlgmr.msra.gmra.mxu1 %vm185_vm1, %v3720_v7 }
0x1595   :  { %3738 = vmatpush3.msra.mxu1 %v4223_v8 }
0x1596   :  { %3739 = vmatprep.subr.mxu1 %v4225_v9 }
0x1597   :  { %3740 = vmatpush3.msra.mxu1 %v4225_v9 }
0x1598   :  { %3741 = vmatprep.subr.mxu1 %v4229_v11 }
0x1599   :  { %3742 = vmatpush3.msra.mxu1 %v4229_v11 }
0x159a   :  { %3743 = vmatprep.subr.mxu1 %v4233_v13 }
0x159b   :  { %3744 = vmatpush3.msra.mxu1 %v4233_v13 }
0x1654   :  { %v3725_v27 = vpop.f32.mrf.mxu1 }
0x1655   :  { %v2902_v40 = vadd.f32 %v3725_v27, %v2619_v62 }
0x1656   :  { %v2892_v41 = vpop.f32.mrf.mxu1 }
0x1657   :  { %v2901_v15 = vadd.f32 %v2892_v41, %v2618_v5  ;;  %v2904_v8 = vadd.f32 %v4209_v42, %v2902_v40 }
0x1659   :  { %v2903_v16 = vadd.f32 %v4209_v42, %v2901_v15 }
0x165b   :  { %3734 = vmatprep.mubr.msk.f32.mxu0 %vm97_vm0, %v2903_v16 }
0x165c   :  { %3735 = vmatmul.mubr.msk.f32.vlgmr.msra.gmra.mxu0 %vm97_vm0, %v2904_v8 }
0x165d   :  { %3749 = vmatpush3.msra.mxu0 %v4263_v48 }
0x165e   :  { %3750 = vmatprep.subr.mxu0 %v4267_v49 }
0x165f   :  { %3751 = vmatpush3.msra.mxu0 %v4267_v49 }
0x1660   :  { %3752 = vmatprep.subr.mxu0 %v4271_v0 }
0x1661   :  { %3753 = vmatpush3.msra.mxu0 %v4271_v0 }
0x1662   :  { %3754 = vmatprep.subr.mxu0 %v4275_v1 }
0x1663   :  { %3755 = vmatpush3.msra.mxu0 %v4275_v1 }
0x1664   :  { %3756 = vmatprep.subr.mxu0 %v4279_v3 }
0x1665   :  { %3757 = vmatpush3.msra.mxu0 %v4279_v3 }
0x1666   :  { %3758 = vmatprep.subr.mxu0 %v4283_v4 }
0x1667   :  { %3759 = vmatpush3.msra.mxu0 %v4283_v4 }
0x1668   :  { %3760 = vmatprep.subr.mxu0 %v4287_v50 }
0x1669   :  { %3761 = vmatpush3.msra.mxu0 %v4287_v50 }
0x166a   :  { %3762 = vmatprep.subr.mxu0 %v4289_v51 }
0x166b   :  { %3763 = vmatpush3.msra.mxu0 %v4289_v51 }
0x171c   :  { %v3736_v42 = vpop.f32.mrf.mxu0 }
0x171d   :  { %v2983_v9 = vadd.f32 %v3736_v42, %v4215_v46 }
0x171e   :  { %v2977_v11 = vpop.f32.mrf.mxu0 }
0x171f   :  { %v2978_v13 = vadd.f32 %v4215_v46, %v2977_v11  ;;  %v2987_v48 = vadd.f32 %v2983_v9, %v2904_v8 }
0x1721   :  { %v2991_v49 = vsel %vm97_vm0, %v2987_v48, 0.0  ;;  %v2986_v0 = vadd.f32 %v2978_v13, %v2903_v16 }
0x1722   :  { %2992 = vadd.xlane.f32.xlu0 %v2991_v49 }
0x1723   :  { %v2988_v1 = vsel %vm97_vm0, %v2986_v0, 0.0 }
0x1724   :  { %2989 = vadd.xlane.f32.xlu1 %v2988_v1 }
0x17ab   :  { %v2993_v3 = vpop.xlane.xlu0 %2992 }
0x17ac   :  { %v2995_v4 = vmul.f32 0.03125, %v2993_v3 }
0x17ad   :  { %v2990_v50 = vpop.xlane.xlu1 %2989 }
0x17ae   :  { %v2997_v12 = vsub.f32 %v2987_v48, %v2995_v4  ;;  %v2994_v18 = vmul.f32 0.03125, %v2990_v50 }
0x17b0   :  { %v2996_v51 = vsub.f32 %v2986_v0, %v2994_v18  ;;  %v2999_v20 = vmul.f32 %v2997_v12, %v2997_v12  ;;  %v3009_v55 = vmul.f32 %v4240_v34, %v2997_v12 }
0x17b2   :  { %v3003_v21 = vsel %vm97_vm0, %v2999_v20, 0.0  ;;  %v2998_v22 = vmul.f32 %v2996_v51, %v2996_v51  ;;  %v3008_v56 = vmul.f32 %v4240_v34, %v2996_v51 }
0x17b3   :  { %3004 = vadd.xlane.f32.xlu0 %v3003_v21 }
0x17b4   :  { %v3000_v46 = vsel %vm97_vm0, %v2998_v22, 0.0 }
0x17b5   :  { %3001 = vadd.xlane.f32.xlu1 %v3000_v46 }
0x183c   :  { %v3005_v23 = vpop.xlane.xlu0 %3004 }
0x183d   :  { %v3007_v24 = vmul.f32 0.032258064, %v3005_v23 }
0x183e   :  { %v3002_v10 = vpop.xlane.xlu1 %3001 }
0x183f   :  { %3868 = vrsqrt.f32 %v3007_v24  ;;  %v3006_v30 = vmul.f32 0.032258064, %v3002_v10  ;;  %vm3019_vm12 = vcmp.eq.f32.partialorder %v3007_v24, inf  ;;  %v3022_v19 = vand.u32 2147483648, %v3007_v24 }
0x1840   :  { %vm3021_vm13 = vcmp.eq.f32.partialorder %v3007_v24, 0.0 }
0x1841   :  { %3870 = vrsqrt.f32 %v3006_v30  ;;  %vm3012_vm14 = vcmp.eq.f32.partialorder %v3006_v30, inf  ;;  %v3015_v39 = vand.u32 2147483648, %v3006_v30  ;;  %vm3014_vm15 = vcmp.eq.f32.partialorder %v3006_v30, 0.0 }
0x184c   :  { %v3869_v17 = vpop.eup %3868 }
0x184d   :  { %v3018_v63 = vmul.f32 %v3869_v17, %v3007_v24 }
0x184e   :  { %v3871_v31 = vpop.eup %3870 }
0x184f   :  { %v3020_v32 = vsel %vm3019_vm12, %v3007_v24, %v3018_v63  ;;  %v3011_v36 = vmul.f32 %v3871_v31, %v3006_v30 }
0x1850   :  { %v3023_v33 = vsel %vm3021_vm13, %v3022_v19, %v3020_v32 }
0x1851   :  { %v3025_v44 = vadd.f32 1e-06, %v3023_v33  ;;  %v3013_v37 = vsel %vm3012_vm14, %v3006_v30, %v3011_v36 }
0x1852   :  { %v3016_v53 = vsel %vm3014_vm15, %v3015_v39, %v3013_v37 }
0x1853   :  { %3872 = vrcp.f32 %v3025_v44  ;;  %v3024_v6 = vadd.f32 1e-06, %v3016_v53 }
0x1855   :  { %3874 = vrcp.f32 %v3024_v6 }
0x1860   :  { %v3873_v38 = vpop.eup %3872 }
0x1861   :  { %v3029_v57 = vmul.f32 %v3873_v38, %v3009_v55 }
0x1862   :  { %v3875_v28 = vpop.eup %3874 }
0x1863   :  { %v3027_v29 = vmul.f32 %v3875_v28, %v3008_v56  ;;  %v3031_v58 = vadd.f32 %v4244_v43, %v3029_v57 }
0x1865   :  { %v3030_v61 = vadd.f32 %v4244_v43, %v3027_v29 }
0x1867   :  { %3745 = vmatprep.mubr.msk.f32.mxu1 %vm97_vm0, %v3030_v61 }
0x1868   :  { %3746 = vmatmul.mubr.msk.f32.vlgmr.msra.gmra.mxu1 %vm97_vm0, %v3031_v58 }
0x1928   :  { %v3747_v47 = vpop.f32.mrf.mxu1 }
0x1929   :  { %v3110_v54 = vadd.f32 %v3747_v47, %v4295_v52 }
0x192a   :  { %v3104_v59 = vpop.f32.mrf.mxu1 }
0x192b   :  { %v3116_v45 = vmul.f32 %v3110_v54, %v3110_v54  ;;  %v3105_v60 = vadd.f32 %v4295_v52, %v3104_v59  ;;  %v3114_v9 = vmul.f32 0.5, %v3110_v54 }
0x192d   :  { %v3118_v62 = vmul.f32 %v3116_v45, %v3110_v54  ;;  %v3115_v34 = vmul.f32 %v3105_v60, %v3105_v60  ;;  %v3113_v8 = vmul.f32 0.5, %v3105_v60 }
0x192f   :  { %v3120_v2 = vmul.f32 0.044715, %v3118_v62  ;;  %v3117_v5 = vmul.f32 %v3115_v34, %v3105_v60 }
0x1931   :  { %v3122_v7 = vadd.f32 %v3120_v2, %v3110_v54  ;;  %v3119_v14 = vmul.f32 0.044715, %v3117_v5 }
0x1933   :  { %v3124_v27 = vmul.f32 0.7978846, %v3122_v7  ;;  %v3121_v40 = vadd.f32 %v3119_v14, %v3105_v60 }
0x1935   :  { %3876 = vtanh.f32 %v3124_v27  ;;  %v3123_v43 = vmul.f32 0.7978846, %v3121_v40 }
0x1937   :  { %3878 = vtanh.f32 %v3123_v43 }
0x1942   :  { %v3877_v41 = vpop.eup %3876 }
0x1943   :  { %v3128_v16 = vadd.f32 1.0, %v3877_v41 }
0x1944   :  { %v3879_v15 = vpop.eup %3878 }
0x1945   :  { %v3127_v42 = vadd.f32 1.0, %v3879_v15  ;;  %v3130_v13 = vmul.f32 %v3128_v16, %v3114_v9 }
0x1947   :  { %v3129_v11 = vmul.f32 %v3127_v42, %v3113_v8 }
0x1949   :  { %3764 = vmatprep.mubr.msk.f32.mxu0 %vm1560_vm7, %v3129_v11 }
0x194a   :  { %3765 = vmatmul.mubr.msk.f32.vlgmr.msra.gmra.mxu0 %vm1560_vm7, %v3130_v13 }
0x1a0a   :  { %v3766_v52 = vpop.f32.mrf.mxu0 }
0x1a0b   :  { %v3209_v48 = vadd.f32 %v3766_v52, %v4301_v26 }
0x1a0c   :  { %v3203_v49 = vpop.f32.mrf.mxu0 }
0x1a0d   :  { %v3204_v0 = vadd.f32 %v4301_v26, %v3203_v49  ;;  %v3213_v1 = vadd.f32 %v3209_v48, %v3031_v58 }
0x1a0f   :  { %v3217_v3 = vsel %vm97_vm0, %v3213_v1, 0.0  ;;  %v3212_v4 = vadd.f32 %v3204_v0, %v3030_v61 }
0x1a10   :  { %3218 = vadd.xlane.f32.xlu0 %v3217_v3 }
0x1a11   :  { %v3214_v50 = vsel %vm97_vm0, %v3212_v4, 0.0 }
0x1a12   :  { %3215 = vadd.xlane.f32.xlu1 %v3214_v50 }
0x1a99   :  { %v3219_v12 = vpop.xlane.xlu0 %3218 }
0x1a9a   :  { %v3221_v18 = vmul.f32 0.03125, %v3219_v12 }
0x1a9b   :  { %v3216_v51 = vpop.xlane.xlu1 %3215 }
0x1a9c   :  { %v3223_v20 = vsub.f32 %v3213_v1, %v3221_v18  ;;  %v3220_v21 = vmul.f32 0.03125, %v3216_v51 }
0x1a9e   :  { %v3222_v22 = vsub.f32 %v3212_v4, %v3220_v21  ;;  %v3225_v46 = vmul.f32 %v3223_v20, %v3223_v20  ;;  %v3235_v56 = vmul.f32 %v4311_v25, %v3223_v20 }
0x1aa0   :  { %v3229_v23 = vsel %vm97_vm0, %v3225_v46, 0.0  ;;  %v3224_v24 = vmul.f32 %v3222_v22, %v3222_v22  ;;  %v3234_v29 = vmul.f32 %v4311_v25, %v3222_v22 }
0x1aa1   :  { %3230 = vadd.xlane.f32.xlu0 %v3229_v23 }
0x1aa2   :  { %v3226_v26 = vsel %vm97_vm0, %v3224_v24, 0.0 }
0x1aa3   :  { %3227 = vadd.xlane.f32.xlu1 %v3226_v26 }
0x1b2a   :  { %v3231_v10 = vpop.xlane.xlu0 %3230 }
0x1b2b   :  { %v3233_v30 = vmul.f32 0.032258064, %v3231_v10 }
0x1b2c   :  { %v3228_v17 = vpop.xlane.xlu1 %3227 }
0x1b2d   :  { %3880 = vrsqrt.f32 %v3233_v30  ;;  %v3232_v63 = vmul.f32 0.032258064, %v3228_v17  ;;  %vm3245_vm1 = vcmp.eq.f32.partialorder %v3233_v30, inf  ;;  %v3248_v32 = vand.u32 2147483648, %v3233_v30 }
0x1b2e   :  { %vm3247_vm2 = vcmp.eq.f32.partialorder %v3233_v30, 0.0 }
0x1b2f   :  { %3882 = vrsqrt.f32 %v3232_v63  ;;  %vm3238_vm3 = vcmp.eq.f32.partialorder %v3232_v63, inf  ;;  %v3241_v53 = vand.u32 2147483648, %v3232_v63  ;;  %vm3240_vm4 = vcmp.eq.f32.partialorder %v3232_v63, 0.0 }
0x1b3a   :  { %v3881_v19 = vpop.eup %3880 }
0x1b3b   :  { %v3244_v31 = vmul.f32 %v3881_v19, %v3233_v30 }
0x1b3c   :  { %v3883_v33 = vpop.eup %3882 }
0x1b3d   :  { %v3246_v36 = vsel %vm3245_vm1, %v3233_v30, %v3244_v31  ;;  %v3237_v39 = vmul.f32 %v3883_v33, %v3232_v63 }
0x1b3e   :  { %v3249_v44 = vsel %vm3247_vm2, %v3248_v32, %v3246_v36 }
0x1b3f   :  { %v3251_v37 = vadd.f32 1e-06, %v3249_v44  ;;  %v3239_v6 = vsel %vm3238_vm3, %v3232_v63, %v3237_v39 }
0x1b40   :  { %v3242_v38 = vsel %vm3240_vm4, %v3241_v53, %v3239_v6 }
0x1b41   :  { %3884 = vrcp.f32 %v3251_v37  ;;  %v3250_v55 = vadd.f32 1e-06, %v3242_v38 }
0x1b43   :  { %3886 = vrcp.f32 %v3250_v55 }
0x1b4e   :  { %v3885_v28 = vpop.eup %3884 }
0x1b4f   :  { %v3255_v57 = vmul.f32 %v3885_v28, %v3235_v56 }
0x1b50   :  { %v3887_v61 = vpop.eup %3886 }
0x1b51   :  { %v3257_v58 = vadd.f32 %v4315_v35, %v3255_v57  ;;  %v3253_v47 = vmul.f32 %v3887_v61, %v3234_v29 }
0x1b53   :  { %3259 = vst.msk [vmem:[#allocation8 + $0x8] sm:$0xff] %vm97_vm0, %v3257_v58  ;;  %v3256_v54 = vadd.f32 %v4315_v35, %v3253_v47 }
0x1b55   :  { %3258 = vst.msk [vmem:[#allocation8] sm:$0xff] %vm97_vm0, %v3256_v54 }
0x1b56   :  { %3961 = shalt.err (!%p3958_p5)
}
0x1b57   :  { %3271 = dma.vmem_to_hbm [thread:$0]  %s3266_s11, 256, %s4520_s3, [#allocation4], %s3978_s17, %s3978_s17, %s3979_s18  }
0x1b58   :  { %3974 = dma.done.wait [#allocation4], 256  }
0x1b59   :  { %3975 = vsyncadd [#allocation4], 4294967040 }
0x1b5a   :  { %3275 = vsyncpa [#allocation3], 1 }
0x1b5b   :  { %3276 = vsyncpa [#allocation6], 1 }
0x1b5c   :  { %3277 = vsyncpa [#allocation4], 1 }

</bundles_post_ra>
